<compile_context>
chip_gen: v6e
topology: v6e:2x2x1
jax: 0.10.0
libtpu: 0.0.40
codegen_flags: <defaults>
</compile_context>

<pallas_src>
import functools

import numpy as np
import jax
import jax.numpy as jnp
from jax.experimental import pallas as pl
from jax.experimental.pallas import tpu as pltpu

NEG_SLOPE = 0.01   # nn.LeakyReLU default
EPS = 1e-5         # BatchNorm default eps

_N_TB_PARAMS = 14  # refs per TemporalBottleneck


def _leaky(v):
    # LeakyReLU(0.01) = max(v, 0.01*v): 2 VPU ops instead of cmp+mul+select.
    return jnp.maximum(v, NEG_SLOPE * v)


def _lane_roll(x, shift, size):
    # pltpu.roll with the shift normalised to [0, size) (XLU lane rotate).
    return pltpu.roll(x, shift % size, axis=1)


def _shift_cols(m, off):
    """result[:, j] = m[:, j + off], zero outside range (zero-padded Conv1d)."""
    if off == 0:
        return m
    rows, cols = m.shape
    if abs(off) >= cols:
        return jnp.zeros_like(m)
    z = jnp.zeros((rows, abs(off)), m.dtype)
    if off > 0:
        return jnp.concatenate([m[:, off:], z], axis=1)
    return jnp.concatenate([z, m[:, :cols + off]], axis=1)


def _reflect_taps(img, masks, W, HW):
    """9 reflect-pad 3x3 neighbour views of img (C, HW); tap order kh*3 + kw."""
    first_col, last_col, first_row, last_row = masks
    east = _lane_roll(img, -1, HW)    # value at (y, x+1)  (wrap only where masked)
    west = _lane_roll(img, 1, HW)     # value at (y, x-1)
    dx_views = (
        jnp.where(first_col, east, west),   # dx=-1: reflect x=-1 -> x=1
        img,                                # dx= 0
        jnp.where(last_col, west, east),    # dx=+1: reflect x=W  -> x=W-2
    )
    taps = [None] * 9
    for kw in range(3):
        v = dx_views[kw]
        north = _lane_roll(v, W, HW)        # value at (y-1, x)
        south = _lane_roll(v, -W, HW)       # value at (y+1, x)
        taps[0 * 3 + kw] = jnp.where(first_row, south, north)   # dy=-1: reflect
        taps[1 * 3 + kw] = v                                     # dy= 0
        taps[2 * 3 + kw] = jnp.where(last_row, north, south)     # dy=+1: reflect
    return taps


# ----------------------------------------------------------------------------
# The fused Pallas kernel: one TAM batch group (T images) of the whole TANet
# forward (2 bottlenecks + final skip) per grid step.
# ----------------------------------------------------------------------------
def _tanet_kernel(*refs, C, T, H, W, K):
    HW = H * W
    pad = K // 2

    x_ref, col_ref, row_ref = refs[0], refs[1], refs[2]
    p1 = refs[3:3 + _N_TB_PARAMS]
    p2 = refs[3 + _N_TB_PARAMS:3 + 2 * _N_TB_PARAMS]
    o_ref = refs[3 + 2 * _N_TB_PARAMS]

    # Border-reflection masks (built once, reused by both bottlenecks / taps).
    col = col_ref[...]
    row = row_ref[...]
    masks = (col == 0, col == W - 1, row == 0, row == H - 1)

    def bottleneck(x_imgs, p):
        (w1_r, b1_r, w2s_r, b2_r, w3_r, b3_r,
         gw1t_r, gsc_r, gsh_r, gw2t_r, lw1_r, lsc_r, lsh_r, lw2_r) = p
        w1, b1 = w1_r[...], b1_r[...]
        w2s, b2 = w2s_r[...], b2_r[...]
        w3, b3 = w3_r[...], b3_r[...]
        gw1t, gsc, gsh, gw2t = gw1t_r[...], gsc_r[...], gsh_r[...], gw2t_r[...]
        lsc, lsh, lw2 = lsc_r[...], lsh_r[...], lw2_r[...]

        # ---- conv1: 1x1 (+folded BN) + LeakyReLU, shared (C,C) bf16 weight ----
        h_imgs = [_leaky(jnp.dot(w1, xi.astype(jnp.bfloat16),
                                 preferred_element_type=jnp.float32) + b1)
                  for xi in x_imgs]

        # ------------------------------- TAM ---------------------------------
        # adaptive_avg_pool2d((1,1)) -> temporal descriptor matrix (C, T)
        pooled = jnp.concatenate(
            [jnp.sum(hi, axis=1, keepdims=True) * (1.0 / HW) for hi in h_imgs],
            axis=1)

        # G: Linear(T,2T,no bias) -> BN1d -> ReLU -> Linear(2T,K,no bias) -> Softmax
        g1 = jnp.dot(pooled, gw1t, preferred_element_type=jnp.float32)     # (C, 2T)
        g1 = jnp.maximum(g1 * gsc + gsh, 0.0)
        ck = jnp.dot(g1, gw2t, preferred_element_type=jnp.float32)         # (C, K)
        ck = jnp.exp(ck - jnp.max(ck, axis=-1, keepdims=True))
        ck = ck / jnp.sum(ck, axis=-1, keepdims=True)                      # softmax(K)

        # L: Conv1d(C->C/4, K, zero pad, no bias) -> BN1d -> ReLU
        #    -> Conv1d(C/4->C, 1, no bias) -> Sigmoid
        a1 = None
        for k in range(K):
            term = jnp.dot(lw1_r[k], _shift_cols(pooled, k - pad),
                           preferred_element_type=jnp.float32)             # (C/4, T)
            a1 = term if a1 is None else a1 + term
        a1 = jnp.maximum(a1 * lsc + lsh, 0.0)
        la = jnp.dot(lw2, a1, preferred_element_type=jnp.float32)          # (C, T)
        la = 1.0 / (1.0 + jnp.exp(-la))                                    # sigmoid

        # modulation + depthwise temporal conv (zero pad along time)
        mod = [la[:, t:t + 1] * h_imgs[t] for t in range(T)]
        tam = []
        for tau in range(T):
            acc = None                 # k == pad always hits src == tau, never None
            for k in range(K):
                src = tau + k - pad
                if 0 <= src < T:
                    term = ck[:, k:k + 1] * mod[src]
                    acc = term if acc is None else acc + term
            tam.append(acc)

        # ---- conv2: reflect-pad 3x3 via XLU rolls + one fused 9-tap matmul ----
        # ---- conv3: 1x1 (+folded BN) + residual + LeakyReLU ----
        out_imgs = []
        for t in range(T):
            gstack = jnp.concatenate(_reflect_taps(tam[t], masks, W, HW),
                                     axis=0).astype(jnp.bfloat16)          # (9C, HW)
            c2 = _leaky(jnp.dot(w2s, gstack,
                                preferred_element_type=jnp.float32) + b2)
            c3 = jnp.dot(w3, c2.astype(jnp.bfloat16),
                         preferred_element_type=jnp.float32) + b3
            out_imgs.append(_leaky(c3 + x_imgs[t]))
        return out_imgs

    x_imgs = [x_ref[t * C:(t + 1) * C, :] for t in range(T)]
    y = bottleneck(x_imgs, p1)
    y = bottleneck(y, p2)
    # final TANet skip connection; one lane-dense full-block store
    o_ref[...] = jnp.concatenate([y[t] + x_imgs[t] for t in range(T)], axis=0)


# ----------------------------------------------------------------------------
# Parameter preparation: fold BN, build kernel-ready (per-image) layouts.
# ----------------------------------------------------------------------------
def _bn_fold(gamma, beta, mean, var):
    scale = gamma / jnp.sqrt(var + EPS)
    shift = beta - mean * scale
    return scale, shift


def init_bottleneck(key, C, t=2, tk=3):
    ks = jax.random.split(key, 20)

    def conv_bn(kk, cin, cout, ksz):
        k1, k2, k3, k4, k5, k6 = jax.random.split(kk, 6)
        w = 0.1 * jax.random.normal(k1, (cout, cin, ksz, ksz), jnp.float32)
        b = 0.05 * jax.random.normal(k2, (cout,), jnp.float32)
        gamma = 1.0 + 0.1 * jax.random.normal(k3, (cout,), jnp.float32)
        beta = 0.05 * jax.random.normal(k4, (cout,), jnp.float32)
        mean = 0.1 * jax.random.normal(k5, (cout,), jnp.float32)
        var = 0.5 + 0.3 * jnp.abs(jax.random.normal(k6, (cout,), jnp.float32))
        scale, shift = _bn_fold(gamma, beta, mean, var)
        return w * scale[:, None, None, None], b * scale + shift

    conv1_w, conv1_b = conv_bn(ks[0], C, C, 1)
    conv2_w, conv2_b = conv_bn(ks[1], C, C, 3)
    conv3_w, conv3_b = conv_bn(ks[2], C, C, 1)

    # TAM.G params
    g_w1 = 0.2 * jax.random.normal(ks[3], (2 * t, t), jnp.float32)
    g_scale, g_shift = _bn_fold(
        1.0 + 0.1 * jax.random.normal(ks[4], (2 * t,), jnp.float32),
        0.05 * jax.random.normal(ks[5], (2 * t,), jnp.float32),
        0.1 * jax.random.normal(ks[6], (2 * t,), jnp.float32),
        0.5 + 0.3 * jnp.abs(jax.random.normal(ks[7], (2 * t,), jnp.float32)),
    )
    g_w2 = 0.2 * jax.random.normal(ks[8], (tk, 2 * t), jnp.float32)

    # TAM.L params
    cr = C // 4
    l_w1 = 0.2 * jax.random.normal(ks[9], (cr, C, 3), jnp.float32)
    l_scale, l_shift = _bn_fold(
        1.0 + 0.1 * jax.random.normal(ks[10], (cr,), jnp.float32),
        0.05 * jax.random.normal(ks[11], (cr,), jnp.float32),
        0.1 * jax.random.normal(ks[12], (cr,), jnp.float32),
        0.5 + 0.3 * jnp.abs(jax.random.normal(ks[13], (cr,), jnp.float32)),
    )
    l_w2 = 0.2 * jax.random.normal(ks[14], (C, cr), jnp.float32)

    return dict(conv1_w=conv1_w, conv1_b=conv1_b,
                conv2_w=conv2_w, conv2_b=conv2_b,
                conv3_w=conv3_w, conv3_b=conv3_b,
                g_w1=g_w1, g_scale=g_scale, g_shift=g_shift, g_w2=g_w2,
                l_w1=l_w1, l_scale=l_scale, l_shift=l_shift, l_w2=l_w2)


def pack_bottleneck_params(p, C, T, K):
    """Raw (PyTorch-shaped, BN-folded) params -> kernel-ready per-image arrays."""
    C4 = C // 4
    w1 = p["conv1_w"].reshape(C, C).astype(jnp.bfloat16)                  # (C, C)
    b1 = p["conv1_b"].reshape(C, 1)
    # stack the 9 conv2 taps along the contraction dim: (C, 9C), tap = kh*3+kw
    w2s = jnp.concatenate([p["conv2_w"][:, :, kh, kw]
                           for kh in range(3) for kw in range(3)],
                          axis=1).astype(jnp.bfloat16)                    # (C, 9C)
    b2 = p["conv2_b"].reshape(C, 1)
    w3 = p["conv3_w"].reshape(C, C).astype(jnp.bfloat16)
    b3 = p["conv3_b"].reshape(C, 1)
    gw1t = p["g_w1"].T                                                    # (T, 2T)
    gsc = p["g_scale"].reshape(1, 2 * T)
    gsh = p["g_shift"].reshape(1, 2 * T)
    gw2t = p["g_w2"].T                                                    # (2T, K)
    lw1 = jnp.transpose(p["l_w1"], (2, 0, 1))                             # (K, C/4, C)
    lsc = p["l_scale"].reshape(C4, 1)
    lsh = p["l_shift"].reshape(C4, 1)
    lw2 = p["l_w2"]                                                       # (C, C/4)
    return (w1, b1, w2s, b2, w3, b3, gw1t, gsc, gsh, gw2t, lw1, lsc, lsh, lw2)


def _build_pixel_index_maps(C, H, W):
    """Host-built (C, HW) int32 column/row index maps for reflection masks."""
    HW = H * W
    col = np.tile(np.arange(W, dtype=np.int32), H)
    row = np.repeat(np.arange(H, dtype=np.int32), W)
    col = np.ascontiguousarray(np.broadcast_to(col[None, :], (C, HW)))
    row = np.ascontiguousarray(np.broadcast_to(row[None, :], (C, HW)))
    return jnp.asarray(col), jnp.asarray(row)


# ----------------------------------------------------------------------------
# Wrapper: one pallas_call, grid over the TAM batch groups.
# ----------------------------------------------------------------------------
def build_tanet_forward(N, C, H, W, raw_params, T=2, K=3):
    NT = 2 * N                 # frames concatenated along the batch axis
    assert NT % T == 0 and C % 4 == 0 and H >= 2 and W >= 2
    NB = NT // T               # TAM batch groups (grid)
    NTC = NT * C
    HW = H * W

    col_idx, row_idx = _build_pixel_index_maps(C, H, W)
    p1 = pack_bottleneck_params(raw_params["tb1"], C, T, K)
    p2 = pack_bottleneck_params(raw_params["tb2"], C, T, K)
    params = (*p1, *p2)

    kernel = functools.partial(_tanet_kernel, C=C, T=T, H=H, W=W, K=K)

    def _full_spec(a):
        zeros = (0,) * a.ndim
        return pl.BlockSpec(a.shape, lambda i: zeros)

    in_specs = ([pl.BlockSpec((T * C, HW), lambda i: (i, 0)),
                 _full_spec(col_idx), _full_spec(row_idx)]
                + [_full_spec(a) for a in params])

    # rough cost hint: 1x1 + 9-tap-3x3 + 1x1 = 11*C^2*HW MACs per image, 2 bottlenecks
    flops = int(2 * 2 * 11 * C * C * HW * T * NB)
    transcendentals = int(2 * NB * C * (K + T))
    bytes_accessed = int(2 * NTC * HW * 4 + 2 * C * HW * 4
                         + sum(int(np.prod(a.shape)) * a.dtype.itemsize
                               for a in params))

    call = pl.pallas_call(
        kernel,
        grid=(NB,),
        in_specs=in_specs,
        out_specs=pl.BlockSpec((T * C, HW), lambda i: (i, 0)),
        out_shape=jax.ShapeDtypeStruct((NTC, HW), jnp.float32),
        compiler_params=pltpu.CompilerParams(
            dimension_semantics=("parallel",)),
        cost_estimate=pl.CostEstimate(flops=flops,
                                      transcendentals=transcendentals,
                                      bytes_accessed=bytes_accessed),
    )

    @jax.jit
    def forward(in0, in1):
        x = jnp.concatenate([in0, in1], axis=0)        # (NT, C, H, W)
        x2d = x.reshape(NTC, HW)                       # pure reshape, no transpose
        out2d = call(x2d, col_idx, row_idx, *params)
        out = out2d.reshape(NT, C, H, W)
        return out[:N], out[N:]

    return forward


# ----------------------------------------------------------------------------
if __name__ == "__main__":
    key = jax.random.PRNGKey(0)
    k_in0, k_in1, k_p1, k_p2 = jax.random.split(key, 4)

    N, C, H, W = 2, 8, 16, 16      # num_feat = 8; two input frames of batch 2
    T, K = 2, 3                    # n_segment=2, temporal kernel 3

    in0 = jax.random.normal(k_in0, (N, C, H, W), jnp.float32)
    in1 = jax.random.normal(k_in1, (N, C, H, W), jnp.float32)

    raw_params = dict(tb1=init_bottleneck(k_p1, C, t=T, tk=K),
                      tb2=init_bottleneck(k_p2, C, t=T, tk=K))

    fwd = build_tanet_forward(N, C, H, W, raw_params, T=T, K=K)
    out0, out1 = fwd(in0, in1)
    jax.block_until_ready((out0, out1))

    assert out0.shape == (N, C, H, W) and out1.shape == (N, C, H, W)
    assert out0.dtype == jnp.float32 and out1.dtype == jnp.float32
    assert bool(jnp.all(jnp.isfinite(out0))) and bool(jnp.all(jnp.isfinite(out1)))
    print("KERNEL_OK")
</pallas_src>

<mosaic_0001>
module attributes {stable_mosaic.version = 11 : i64} {
  func.func @_tanet_kernel(%arg0: i32, %arg1: memref<16x256xf32, #tpu.memory_space<vmem>>, %arg2: memref<8x256xi32, #tpu.memory_space<vmem>>, %arg3: memref<8x256xi32, #tpu.memory_space<vmem>>, %arg4: memref<8x8xbf16, #tpu.memory_space<vmem>>, %arg5: memref<8x1xf32, #tpu.memory_space<vmem>>, %arg6: memref<8x72xbf16, #tpu.memory_space<vmem>>, %arg7: memref<8x1xf32, #tpu.memory_space<vmem>>, %arg8: memref<8x8xbf16, #tpu.memory_space<vmem>>, %arg9: memref<8x1xf32, #tpu.memory_space<vmem>>, %arg10: memref<2x4xf32, #tpu.memory_space<vmem>>, %arg11: memref<1x4xf32, #tpu.memory_space<vmem>>, %arg12: memref<1x4xf32, #tpu.memory_space<vmem>>, %arg13: memref<4x3xf32, #tpu.memory_space<vmem>>, %arg14: memref<3x2x8xf32, #tpu.memory_space<vmem>>, %arg15: memref<2x1xf32, #tpu.memory_space<vmem>>, %arg16: memref<2x1xf32, #tpu.memory_space<vmem>>, %arg17: memref<8x2xf32, #tpu.memory_space<vmem>>, %arg18: memref<8x8xbf16, #tpu.memory_space<vmem>>, %arg19: memref<8x1xf32, #tpu.memory_space<vmem>>, %arg20: memref<8x72xbf16, #tpu.memory_space<vmem>>, %arg21: memref<8x1xf32, #tpu.memory_space<vmem>>, %arg22: memref<8x8xbf16, #tpu.memory_space<vmem>>, %arg23: memref<8x1xf32, #tpu.memory_space<vmem>>, %arg24: memref<2x4xf32, #tpu.memory_space<vmem>>, %arg25: memref<1x4xf32, #tpu.memory_space<vmem>>, %arg26: memref<1x4xf32, #tpu.memory_space<vmem>>, %arg27: memref<4x3xf32, #tpu.memory_space<vmem>>, %arg28: memref<3x2x8xf32, #tpu.memory_space<vmem>>, %arg29: memref<2x1xf32, #tpu.memory_space<vmem>>, %arg30: memref<2x1xf32, #tpu.memory_space<vmem>>, %arg31: memref<8x2xf32, #tpu.memory_space<vmem>>, %arg32: memref<16x256xf32, #tpu.memory_space<vmem>>) attributes {dimension_semantics = [#tpu.dimension_semantics<parallel>], iteration_bounds = array<i64: 2>, scalar_prefetch = 0 : i64, scratch_operands = 0 : i64, tpu.core_type = #tpu.core_type<tc>, window_params = [{transform_indices = @transform_0, window_bounds = array<i64: 16, 256>}, {pipeline_mode = #tpu.pipeline_mode<synchronous>, transform_indices = @transform_1, window_bounds = array<i64: 8, 256>}, {pipeline_mode = #tpu.pipeline_mode<synchronous>, transform_indices = @transform_2, window_bounds = array<i64: 8, 256>}, {pipeline_mode = #tpu.pipeline_mode<synchronous>, transform_indices = @transform_3, window_bounds = array<i64: 8, 8>}, {pipeline_mode = #tpu.pipeline_mode<synchronous>, transform_indices = @transform_4, window_bounds = array<i64: 8, 1>}, {pipeline_mode = #tpu.pipeline_mode<synchronous>, transform_indices = @transform_5, window_bounds = array<i64: 8, 72>}, {pipeline_mode = #tpu.pipeline_mode<synchronous>, transform_indices = @transform_6, window_bounds = array<i64: 8, 1>}, {pipeline_mode = #tpu.pipeline_mode<synchronous>, transform_indices = @transform_7, window_bounds = array<i64: 8, 8>}, {pipeline_mode = #tpu.pipeline_mode<synchronous>, transform_indices = @transform_8, window_bounds = array<i64: 8, 1>}, {pipeline_mode = #tpu.pipeline_mode<synchronous>, transform_indices = @transform_9, window_bounds = array<i64: 2, 4>}, {pipeline_mode = #tpu.pipeline_mode<synchronous>, transform_indices = @transform_10, window_bounds = array<i64: 1, 4>}, {pipeline_mode = #tpu.pipeline_mode<synchronous>, transform_indices = @transform_11, window_bounds = array<i64: 1, 4>}, {pipeline_mode = #tpu.pipeline_mode<synchronous>, transform_indices = @transform_12, window_bounds = array<i64: 4, 3>}, {pipeline_mode = #tpu.pipeline_mode<synchronous>, transform_indices = @transform_13, window_bounds = array<i64: 3, 2, 8>}, {pipeline_mode = #tpu.pipeline_mode<synchronous>, transform_indices = @transform_14, window_bounds = array<i64: 2, 1>}, {pipeline_mode = #tpu.pipeline_mode<synchronous>, transform_indices = @transform_15, window_bounds = array<i64: 2, 1>}, {pipeline_mode = #tpu.pipeline_mode<synchronous>, transform_indices = @transform_16, window_bounds = array<i64: 8, 2>}, {pipeline_mode = #tpu.pipeline_mode<synchronous>, transform_indices = @transform_17, window_bounds = array<i64: 8, 8>}, {pipeline_mode = #tpu.pipeline_mode<synchronous>, transform_indices = @transform_18, window_bounds = array<i64: 8, 1>}, {pipeline_mode = #tpu.pipeline_mode<synchronous>, transform_indices = @transform_19, window_bounds = array<i64: 8, 72>}, {pipeline_mode = #tpu.pipeline_mode<synchronous>, transform_indices = @transform_20, window_bounds = array<i64: 8, 1>}, {pipeline_mode = #tpu.pipeline_mode<synchronous>, transform_indices = @transform_21, window_bounds = array<i64: 8, 8>}, {pipeline_mode = #tpu.pipeline_mode<synchronous>, transform_indices = @transform_22, window_bounds = array<i64: 8, 1>}, {pipeline_mode = #tpu.pipeline_mode<synchronous>, transform_indices = @transform_23, window_bounds = array<i64: 2, 4>}, {pipeline_mode = #tpu.pipeline_mode<synchronous>, transform_indices = @transform_24, window_bounds = array<i64: 1, 4>}, {pipeline_mode = #tpu.pipeline_mode<synchronous>, transform_indices = @transform_25, window_bounds = array<i64: 1, 4>}, {pipeline_mode = #tpu.pipeline_mode<synchronous>, transform_indices = @transform_26, window_bounds = array<i64: 4, 3>}, {pipeline_mode = #tpu.pipeline_mode<synchronous>, transform_indices = @transform_27, window_bounds = array<i64: 3, 2, 8>}, {pipeline_mode = #tpu.pipeline_mode<synchronous>, transform_indices = @transform_28, window_bounds = array<i64: 2, 1>}, {pipeline_mode = #tpu.pipeline_mode<synchronous>, transform_indices = @transform_29, window_bounds = array<i64: 2, 1>}, {pipeline_mode = #tpu.pipeline_mode<synchronous>, transform_indices = @transform_30, window_bounds = array<i64: 8, 2>}, {transform_indices = @transform_31, window_bounds = array<i64: 16, 256>}]} {
    %c0 = arith.constant 0 : index
    %c0_0 = arith.constant 0 : index
    %0 = vector.load %arg2[%c0, %c0_0] : memref<8x256xi32, #tpu.memory_space<vmem>>, vector<8x256xi32>
    %c0_1 = arith.constant 0 : index
    %c0_2 = arith.constant 0 : index
    %1 = vector.load %arg3[%c0_1, %c0_2] : memref<8x256xi32, #tpu.memory_space<vmem>>, vector<8x256xi32>
    %c0_i32 = arith.constant 0 : i32
    %2 = vector.broadcast %c0_i32 : i32 to vector<8x256xi32>
    %3 = arith.cmpi eq, %0, %2 : vector<8x256xi32>
    %c15_i32 = arith.constant 15 : i32
    %4 = vector.broadcast %c15_i32 : i32 to vector<8x256xi32>
    %5 = arith.cmpi eq, %0, %4 : vector<8x256xi32>
    %c0_i32_3 = arith.constant 0 : i32
    %6 = vector.broadcast %c0_i32_3 : i32 to vector<8x256xi32>
    %7 = arith.cmpi eq, %1, %6 : vector<8x256xi32>
    %c15_i32_4 = arith.constant 15 : i32
    %8 = vector.broadcast %c15_i32_4 : i32 to vector<8x256xi32>
    %9 = arith.cmpi eq, %1, %8 : vector<8x256xi32>
    %c0_5 = arith.constant 0 : index
    %c0_6 = arith.constant 0 : index
    %10 = vector.load %arg1[%c0_5, %c0_6] : memref<16x256xf32, #tpu.memory_space<vmem>>, vector<8x256xf32>
    %c8 = arith.constant 8 : index
    %c0_7 = arith.constant 0 : index
    %11 = vector.load %arg1[%c8, %c0_7] : memref<16x256xf32, #tpu.memory_space<vmem>>, vector<8x256xf32>
    %c0_8 = arith.constant 0 : index
    %c0_9 = arith.constant 0 : index
    %12 = vector.load %arg4[%c0_8, %c0_9] : memref<8x8xbf16, #tpu.memory_space<vmem>>, vector<8x8xbf16>
    %c0_10 = arith.constant 0 : index
    %c0_11 = arith.constant 0 : index
    %13 = vector.load %arg5[%c0_10, %c0_11] : memref<8x1xf32, #tpu.memory_space<vmem>>, vector<8x1xf32>
    %c0_12 = arith.constant 0 : index
    %c0_13 = arith.constant 0 : index
    %14 = vector.load %arg6[%c0_12, %c0_13] : memref<8x72xbf16, #tpu.memory_space<vmem>>, vector<8x72xbf16>
    %c0_14 = arith.constant 0 : index
    %c0_15 = arith.constant 0 : index
    %15 = vector.load %arg7[%c0_14, %c0_15] : memref<8x1xf32, #tpu.memory_space<vmem>>, vector<8x1xf32>
    %c0_16 = arith.constant 0 : index
    %c0_17 = arith.constant 0 : index
    %16 = vector.load %arg8[%c0_16, %c0_17] : memref<8x8xbf16, #tpu.memory_space<vmem>>, vector<8x8xbf16>
    %c0_18 = arith.constant 0 : index
    %c0_19 = arith.constant 0 : index
    %17 = vector.load %arg9[%c0_18, %c0_19] : memref<8x1xf32, #tpu.memory_space<vmem>>, vector<8x1xf32>
    %c0_20 = arith.constant 0 : index
    %c0_21 = arith.constant 0 : index
    %18 = vector.load %arg10[%c0_20, %c0_21] : memref<2x4xf32, #tpu.memory_space<vmem>>, vector<2x4xf32>
    %c0_22 = arith.constant 0 : index
    %c0_23 = arith.constant 0 : index
    %19 = vector.load %arg11[%c0_22, %c0_23] : memref<1x4xf32, #tpu.memory_space<vmem>>, vector<1x4xf32>
    %c0_24 = arith.constant 0 : index
    %c0_25 = arith.constant 0 : index
    %20 = vector.load %arg12[%c0_24, %c0_25] : memref<1x4xf32, #tpu.memory_space<vmem>>, vector<1x4xf32>
    %c0_26 = arith.constant 0 : index
    %c0_27 = arith.constant 0 : index
    %21 = vector.load %arg13[%c0_26, %c0_27] : memref<4x3xf32, #tpu.memory_space<vmem>>, vector<4x3xf32>
    %c0_28 = arith.constant 0 : index
    %c0_29 = arith.constant 0 : index
    %22 = vector.load %arg15[%c0_28, %c0_29] : memref<2x1xf32, #tpu.memory_space<vmem>>, vector<2x1xf32>
    %c0_30 = arith.constant 0 : index
    %c0_31 = arith.constant 0 : index
    %23 = vector.load %arg16[%c0_30, %c0_31] : memref<2x1xf32, #tpu.memory_space<vmem>>, vector<2x1xf32>
    %c0_32 = arith.constant 0 : index
    %c0_33 = arith.constant 0 : index
    %24 = vector.load %arg17[%c0_32, %c0_33] : memref<8x2xf32, #tpu.memory_space<vmem>>, vector<8x2xf32>
    %25 = arith.truncf %10 : vector<8x256xf32> to vector<8x256xbf16>
    %cst = arith.constant dense<0.000000e+00> : vector<8x256xf32>
    %26 = tpu.matmul %12, %25, %cst {dimension_numbers = #tpu.dot_dimension_numbers<[1], [0], [0], [1], [0, 0, 1, 1], [], []>} : vector<8x8xbf16>, vector<8x256xbf16>, vector<8x256xf32> -> vector<8x256xf32>
    %27 = vector.broadcast %13 : vector<8x1xf32> to vector<8x256xf32>
    %28 = arith.addf %26, %27 : vector<8x256xf32>
    %cst_34 = arith.constant 0.00999999977 : f32
    %29 = vector.broadcast %cst_34 : f32 to vector<8x256xf32>
    %30 = arith.mulf %29, %28 : vector<8x256xf32>
    %31 = arith.maximumf %28, %30 : vector<8x256xf32>
    %32 = arith.truncf %11 : vector<8x256xf32> to vector<8x256xbf16>
    %cst_35 = arith.constant dense<0.000000e+00> : vector<8x256xf32>
    %33 = tpu.matmul %12, %32, %cst_35 {dimension_numbers = #tpu.dot_dimension_numbers<[1], [0], [0], [1], [0, 0, 1, 1], [], []>} : vector<8x8xbf16>, vector<8x256xbf16>, vector<8x256xf32> -> vector<8x256xf32>
    %34 = vector.broadcast %13 : vector<8x1xf32> to vector<8x256xf32>
    %35 = arith.addf %33, %34 : vector<8x256xf32>
    %cst_36 = arith.constant 0.00999999977 : f32
    %36 = vector.broadcast %cst_36 : f32 to vector<8x256xf32>
    %37 = arith.mulf %36, %35 : vector<8x256xf32>
    %38 = arith.maximumf %35, %37 : vector<8x256xf32>
    %cst_37 = arith.constant dense<0.000000e+00> : vector<8xf32>
    %39 = vector.multi_reduction <add>, %31, %cst_37 [1] : vector<8x256xf32> to vector<8xf32>
    %40 = vector.shape_cast %39 : vector<8xf32> to vector<8x1xf32>
    %cst_38 = arith.constant 3.906250e-03 : f32
    %41 = vector.broadcast %cst_38 : f32 to vector<8x1xf32>
    %42 = arith.mulf %40, %41 : vector<8x1xf32>
    %cst_39 = arith.constant dense<0.000000e+00> : vector<8xf32>
    %43 = vector.multi_reduction <add>, %38, %cst_39 [1] : vector<8x256xf32> to vector<8xf32>
    %44 = vector.shape_cast %43 : vector<8xf32> to vector<8x1xf32>
    %cst_40 = arith.constant 3.906250e-03 : f32
    %45 = vector.broadcast %cst_40 : f32 to vector<8x1xf32>
    %46 = arith.mulf %44, %45 : vector<8x1xf32>
    %47 = tpu.concatenate %42, %46 in 1 : vector<8x1xf32>, vector<8x1xf32> -> vector<8x2xf32>
    %cst_41 = arith.constant dense<0.000000e+00> : vector<8x4xf32>
    %48 = tpu.matmul %47, %18, %cst_41 {dimension_numbers = #tpu.dot_dimension_numbers<[1], [0], [0], [1], [0, 0, 1, 1], [], []>} : vector<8x2xf32>, vector<2x4xf32>, vector<8x4xf32> -> vector<8x4xf32>
    %49 = vector.broadcast %19 : vector<1x4xf32> to vector<8x4xf32>
    %50 = arith.mulf %48, %49 : vector<8x4xf32>
    %51 = vector.broadcast %20 : vector<1x4xf32> to vector<8x4xf32>
    %52 = arith.addf %50, %51 : vector<8x4xf32>
    %cst_42 = arith.constant 0.000000e+00 : f32
    %53 = vector.broadcast %cst_42 : f32 to vector<8x4xf32>
    %54 = arith.maximumf %52, %53 : vector<8x4xf32>
    %cst_43 = arith.constant dense<0.000000e+00> : vector<8x3xf32>
    %55 = tpu.matmul %54, %21, %cst_43 {dimension_numbers = #tpu.dot_dimension_numbers<[1], [0], [0], [1], [0, 0, 1, 1], [], []>} : vector<8x4xf32>, vector<4x3xf32>, vector<8x3xf32> -> vector<8x3xf32>
    %cst_44 = arith.constant dense<0xFF800000> : vector<8xf32>
    %56 = vector.multi_reduction <maximumf>, %55, %cst_44 [1] : vector<8x3xf32> to vector<8xf32>
    %57 = vector.shape_cast %56 : vector<8xf32> to vector<8x1xf32>
    %58 = vector.broadcast %57 : vector<8x1xf32> to vector<8x3xf32>
    %59 = arith.subf %55, %58 : vector<8x3xf32>
    %60 = math.exp %59 : vector<8x3xf32>
    %cst_45 = arith.constant dense<0.000000e+00> : vector<8xf32>
    %61 = vector.multi_reduction <add>, %60, %cst_45 [1] : vector<8x3xf32> to vector<8xf32>
    %62 = vector.shape_cast %61 : vector<8xf32> to vector<8x1xf32>
    %63 = vector.broadcast %62 : vector<8x1xf32> to vector<8x3xf32>
    %64 = arith.divf %60, %63 : vector<8x3xf32>
    %c0_46 = arith.constant 0 : index
    %c0_47 = arith.constant 0 : index
    %c0_48 = arith.constant 0 : index
    %65 = vector.load %arg14[%c0_46, %c0_47, %c0_48] : memref<3x2x8xf32, #tpu.memory_space<vmem>>, vector<1x2x8xf32>
    %66 = vector.shape_cast %65 : vector<1x2x8xf32> to vector<2x8xf32>
    %cst_49 = arith.constant 0.000000e+00 : f32
    %67 = vector.broadcast %cst_49 : f32 to vector<8x1xf32>
    %68 = vector.extract_strided_slice %47 {offsets = [0, 0], sizes = [8, 1], strides = [1, 1]} : vector<8x2xf32> to vector<8x1xf32>
    %69 = tpu.concatenate %67, %68 in 1 : vector<8x1xf32>, vector<8x1xf32> -> vector<8x2xf32>
    %cst_50 = arith.constant dense<0.000000e+00> : vector<2x2xf32>
    %70 = tpu.matmul %66, %69, %cst_50 {dimension_numbers = #tpu.dot_dimension_numbers<[1], [0], [0], [1], [0, 0, 1, 1], [], []>} : vector<2x8xf32>, vector<8x2xf32>, vector<2x2xf32> -> vector<2x2xf32>
    %c1 = arith.constant 1 : index
    %c0_51 = arith.constant 0 : index
    %c0_52 = arith.constant 0 : index
    %71 = vector.load %arg14[%c1, %c0_51, %c0_52] : memref<3x2x8xf32, #tpu.memory_space<vmem>>, vector<1x2x8xf32>
    %72 = vector.shape_cast %71 : vector<1x2x8xf32> to vector<2x8xf32>
    %cst_53 = arith.constant dense<0.000000e+00> : vector<2x2xf32>
    %73 = tpu.matmul %72, %47, %cst_53 {dimension_numbers = #tpu.dot_dimension_numbers<[1], [0], [0], [1], [0, 0, 1, 1], [], []>} : vector<2x8xf32>, vector<8x2xf32>, vector<2x2xf32> -> vector<2x2xf32>
    %74 = arith.addf %70, %73 : vector<2x2xf32>
    %c2 = arith.constant 2 : index
    %c0_54 = arith.constant 0 : index
    %c0_55 = arith.constant 0 : index
    %75 = vector.load %arg14[%c2, %c0_54, %c0_55] : memref<3x2x8xf32, #tpu.memory_space<vmem>>, vector<1x2x8xf32>
    %76 = vector.shape_cast %75 : vector<1x2x8xf32> to vector<2x8xf32>
    %cst_56 = arith.constant 0.000000e+00 : f32
    %77 = vector.broadcast %cst_56 : f32 to vector<8x1xf32>
    %78 = vector.extract_strided_slice %47 {offsets = [0, 1], sizes = [8, 1], strides = [1, 1]} : vector<8x2xf32> to vector<8x1xf32>
    %79 = tpu.concatenate %78, %77 in 1 : vector<8x1xf32>, vector<8x1xf32> -> vector<8x2xf32>
    %cst_57 = arith.constant dense<0.000000e+00> : vector<2x2xf32>
    %80 = tpu.matmul %76, %79, %cst_57 {dimension_numbers = #tpu.dot_dimension_numbers<[1], [0], [0], [1], [0, 0, 1, 1], [], []>} : vector<2x8xf32>, vector<8x2xf32>, vector<2x2xf32> -> vector<2x2xf32>
    %81 = arith.addf %74, %80 : vector<2x2xf32>
    %82 = vector.broadcast %22 : vector<2x1xf32> to vector<2x2xf32>
    %83 = arith.mulf %81, %82 : vector<2x2xf32>
    %84 = vector.broadcast %23 : vector<2x1xf32> to vector<2x2xf32>
    %85 = arith.addf %83, %84 : vector<2x2xf32>
    %cst_58 = arith.constant 0.000000e+00 : f32
    %86 = vector.broadcast %cst_58 : f32 to vector<2x2xf32>
    %87 = arith.maximumf %85, %86 : vector<2x2xf32>
    %cst_59 = arith.constant dense<0.000000e+00> : vector<8x2xf32>
    %88 = tpu.matmul %24, %87, %cst_59 {dimension_numbers = #tpu.dot_dimension_numbers<[1], [0], [0], [1], [0, 0, 1, 1], [], []>} : vector<8x2xf32>, vector<2x2xf32>, vector<8x2xf32> -> vector<8x2xf32>
    %cst_60 = arith.constant 0.000000e+00 : f32
    %89 = vector.broadcast %cst_60 : f32 to vector<8x2xf32>
    %90 = arith.subf %89, %88 : vector<8x2xf32>
    %91 = math.exp %90 : vector<8x2xf32>
    %cst_61 = arith.constant 1.000000e+00 : f32
    %92 = vector.broadcast %cst_61 : f32 to vector<8x2xf32>
    %93 = arith.addf %92, %91 : vector<8x2xf32>
    %cst_62 = arith.constant 1.000000e+00 : f32
    %94 = vector.broadcast %cst_62 : f32 to vector<8x2xf32>
    %95 = arith.divf %94, %93 : vector<8x2xf32>
    %96 = vector.extract_strided_slice %95 {offsets = [0, 0], sizes = [8, 1], strides = [1, 1]} : vector<8x2xf32> to vector<8x1xf32>
    %97 = vector.broadcast %96 : vector<8x1xf32> to vector<8x256xf32>
    %98 = arith.mulf %97, %31 : vector<8x256xf32>
    %99 = vector.extract_strided_slice %95 {offsets = [0, 1], sizes = [8, 1], strides = [1, 1]} : vector<8x2xf32> to vector<8x1xf32>
    %100 = vector.broadcast %99 : vector<8x1xf32> to vector<8x256xf32>
    %101 = arith.mulf %100, %38 : vector<8x256xf32>
    %102 = vector.extract_strided_slice %64 {offsets = [0, 1], sizes = [8, 1], strides = [1, 1]} : vector<8x3xf32> to vector<8x1xf32>
    %103 = vector.broadcast %102 : vector<8x1xf32> to vector<8x256xf32>
    %104 = arith.mulf %103, %98 : vector<8x256xf32>
    %105 = vector.extract_strided_slice %64 {offsets = [0, 2], sizes = [8, 1], strides = [1, 1]} : vector<8x3xf32> to vector<8x1xf32>
    %106 = vector.broadcast %105 : vector<8x1xf32> to vector<8x256xf32>
    %107 = arith.mulf %106, %101 : vector<8x256xf32>
    %108 = arith.addf %104, %107 : vector<8x256xf32>
    %109 = vector.extract_strided_slice %64 {offsets = [0, 0], sizes = [8, 1], strides = [1, 1]} : vector<8x3xf32> to vector<8x1xf32>
    %110 = vector.broadcast %109 : vector<8x1xf32> to vector<8x256xf32>
    %111 = arith.mulf %110, %98 : vector<8x256xf32>
    %112 = vector.extract_strided_slice %64 {offsets = [0, 1], sizes = [8, 1], strides = [1, 1]} : vector<8x3xf32> to vector<8x1xf32>
    %113 = vector.broadcast %112 : vector<8x1xf32> to vector<8x256xf32>
    %114 = arith.mulf %113, %101 : vector<8x256xf32>
    %115 = arith.addf %111, %114 : vector<8x256xf32>
    %c255_i32 = arith.constant 255 : i32
    %116 = tpu.dynamic_rotate %108 by %c255_i32 dim 1 : vector<8x256xf32>, i32 -> vector<8x256xf32>
    %c1_i32 = arith.constant 1 : i32
    %117 = tpu.dynamic_rotate %108 by %c1_i32 dim 1 : vector<8x256xf32>, i32 -> vector<8x256xf32>
    %118 = arith.select %3, %116, %117 : vector<8x256xi1>, vector<8x256xf32>
    %119 = arith.select %5, %117, %116 : vector<8x256xi1>, vector<8x256xf32>
    %c16_i32 = arith.constant 16 : i32
    %120 = tpu.dynamic_rotate %118 by %c16_i32 dim 1 : vector<8x256xf32>, i32 -> vector<8x256xf32>
    %c240_i32 = arith.constant 240 : i32
    %121 = tpu.dynamic_rotate %118 by %c240_i32 dim 1 : vector<8x256xf32>, i32 -> vector<8x256xf32>
    %122 = arith.select %7, %121, %120 : vector<8x256xi1>, vector<8x256xf32>
    %123 = arith.select %9, %120, %121 : vector<8x256xi1>, vector<8x256xf32>
    %c16_i32_63 = arith.constant 16 : i32
    %124 = tpu.dynamic_rotate %108 by %c16_i32_63 dim 1 : vector<8x256xf32>, i32 -> vector<8x256xf32>
    %c240_i32_64 = arith.constant 240 : i32
    %125 = tpu.dynamic_rotate %108 by %c240_i32_64 dim 1 : vector<8x256xf32>, i32 -> vector<8x256xf32>
    %126 = arith.select %7, %125, %124 : vector<8x256xi1>, vector<8x256xf32>
    %127 = arith.select %9, %124, %125 : vector<8x256xi1>, vector<8x256xf32>
    %c16_i32_65 = arith.constant 16 : i32
    %128 = tpu.dynamic_rotate %119 by %c16_i32_65 dim 1 : vector<8x256xf32>, i32 -> vector<8x256xf32>
    %c240_i32_66 = arith.constant 240 : i32
    %129 = tpu.dynamic_rotate %119 by %c240_i32_66 dim 1 : vector<8x256xf32>, i32 -> vector<8x256xf32>
    %130 = arith.select %7, %129, %128 : vector<8x256xi1>, vector<8x256xf32>
    %131 = arith.select %9, %128, %129 : vector<8x256xi1>, vector<8x256xf32>
    %132 = tpu.concatenate %122, %126, %130, %118, %108, %119, %123, %127, %131 in 0 : vector<8x256xf32>, vector<8x256xf32>, vector<8x256xf32>, vector<8x256xf32>, vector<8x256xf32>, vector<8x256xf32>, vector<8x256xf32>, vector<8x256xf32>, vector<8x256xf32> -> vector<72x256xf32>
    %133 = arith.truncf %132 : vector<72x256xf32> to vector<72x256xbf16>
    %cst_67 = arith.constant dense<0.000000e+00> : vector<8x256xf32>
    %134 = tpu.matmul %14, %133, %cst_67 {dimension_numbers = #tpu.dot_dimension_numbers<[1], [0], [0], [1], [0, 0, 1, 1], [], []>} : vector<8x72xbf16>, vector<72x256xbf16>, vector<8x256xf32> -> vector<8x256xf32>
    %135 = vector.broadcast %15 : vector<8x1xf32> to vector<8x256xf32>
    %136 = arith.addf %134, %135 : vector<8x256xf32>
    %cst_68 = arith.constant 0.00999999977 : f32
    %137 = vector.broadcast %cst_68 : f32 to vector<8x256xf32>
    %138 = arith.mulf %137, %136 : vector<8x256xf32>
    %139 = arith.maximumf %136, %138 : vector<8x256xf32>
    %140 = arith.truncf %139 : vector<8x256xf32> to vector<8x256xbf16>
    %cst_69 = arith.constant dense<0.000000e+00> : vector<8x256xf32>
    %141 = tpu.matmul %16, %140, %cst_69 {dimension_numbers = #tpu.dot_dimension_numbers<[1], [0], [0], [1], [0, 0, 1, 1], [], []>} : vector<8x8xbf16>, vector<8x256xbf16>, vector<8x256xf32> -> vector<8x256xf32>
    %142 = vector.broadcast %17 : vector<8x1xf32> to vector<8x256xf32>
    %143 = arith.addf %141, %142 : vector<8x256xf32>
    %144 = arith.addf %143, %10 : vector<8x256xf32>
    %cst_70 = arith.constant 0.00999999977 : f32
    %145 = vector.broadcast %cst_70 : f32 to vector<8x256xf32>
    %146 = arith.mulf %145, %144 : vector<8x256xf32>
    %147 = arith.maximumf %144, %146 : vector<8x256xf32>
    %c255_i32_71 = arith.constant 255 : i32
    %148 = tpu.dynamic_rotate %115 by %c255_i32_71 dim 1 : vector<8x256xf32>, i32 -> vector<8x256xf32>
    %c1_i32_72 = arith.constant 1 : i32
    %149 = tpu.dynamic_rotate %115 by %c1_i32_72 dim 1 : vector<8x256xf32>, i32 -> vector<8x256xf32>
    %150 = arith.select %3, %148, %149 : vector<8x256xi1>, vector<8x256xf32>
    %151 = arith.select %5, %149, %148 : vector<8x256xi1>, vector<8x256xf32>
    %c16_i32_73 = arith.constant 16 : i32
    %152 = tpu.dynamic_rotate %150 by %c16_i32_73 dim 1 : vector<8x256xf32>, i32 -> vector<8x256xf32>
    %c240_i32_74 = arith.constant 240 : i32
    %153 = tpu.dynamic_rotate %150 by %c240_i32_74 dim 1 : vector<8x256xf32>, i32 -> vector<8x256xf32>
    %154 = arith.select %7, %153, %152 : vector<8x256xi1>, vector<8x256xf32>
    %155 = arith.select %9, %152, %153 : vector<8x256xi1>, vector<8x256xf32>
    %c16_i32_75 = arith.constant 16 : i32
    %156 = tpu.dynamic_rotate %115 by %c16_i32_75 dim 1 : vector<8x256xf32>, i32 -> vector<8x256xf32>
    %c240_i32_76 = arith.constant 240 : i32
    %157 = tpu.dynamic_rotate %115 by %c240_i32_76 dim 1 : vector<8x256xf32>, i32 -> vector<8x256xf32>
    %158 = arith.select %7, %157, %156 : vector<8x256xi1>, vector<8x256xf32>
    %159 = arith.select %9, %156, %157 : vector<8x256xi1>, vector<8x256xf32>
    %c16_i32_77 = arith.constant 16 : i32
    %160 = tpu.dynamic_rotate %151 by %c16_i32_77 dim 1 : vector<8x256xf32>, i32 -> vector<8x256xf32>
    %c240_i32_78 = arith.constant 240 : i32
    %161 = tpu.dynamic_rotate %151 by %c240_i32_78 dim 1 : vector<8x256xf32>, i32 -> vector<8x256xf32>
    %162 = arith.select %7, %161, %160 : vector<8x256xi1>, vector<8x256xf32>
    %163 = arith.select %9, %160, %161 : vector<8x256xi1>, vector<8x256xf32>
    %164 = tpu.concatenate %154, %158, %162, %150, %115, %151, %155, %159, %163 in 0 : vector<8x256xf32>, vector<8x256xf32>, vector<8x256xf32>, vector<8x256xf32>, vector<8x256xf32>, vector<8x256xf32>, vector<8x256xf32>, vector<8x256xf32>, vector<8x256xf32> -> vector<72x256xf32>
    %165 = arith.truncf %164 : vector<72x256xf32> to vector<72x256xbf16>
    %cst_79 = arith.constant dense<0.000000e+00> : vector<8x256xf32>
    %166 = tpu.matmul %14, %165, %cst_79 {dimension_numbers = #tpu.dot_dimension_numbers<[1], [0], [0], [1], [0, 0, 1, 1], [], []>} : vector<8x72xbf16>, vector<72x256xbf16>, vector<8x256xf32> -> vector<8x256xf32>
    %167 = vector.broadcast %15 : vector<8x1xf32> to vector<8x256xf32>
    %168 = arith.addf %166, %167 : vector<8x256xf32>
    %cst_80 = arith.constant 0.00999999977 : f32
    %169 = vector.broadcast %cst_80 : f32 to vector<8x256xf32>
    %170 = arith.mulf %169, %168 : vector<8x256xf32>
    %171 = arith.maximumf %168, %170 : vector<8x256xf32>
    %172 = arith.truncf %171 : vector<8x256xf32> to vector<8x256xbf16>
    %cst_81 = arith.constant dense<0.000000e+00> : vector<8x256xf32>
    %173 = tpu.matmul %16, %172, %cst_81 {dimension_numbers = #tpu.dot_dimension_numbers<[1], [0], [0], [1], [0, 0, 1, 1], [], []>} : vector<8x8xbf16>, vector<8x256xbf16>, vector<8x256xf32> -> vector<8x256xf32>
    %174 = vector.broadcast %17 : vector<8x1xf32> to vector<8x256xf32>
    %175 = arith.addf %173, %174 : vector<8x256xf32>
    %176 = arith.addf %175, %11 : vector<8x256xf32>
    %cst_82 = arith.constant 0.00999999977 : f32
    %177 = vector.broadcast %cst_82 : f32 to vector<8x256xf32>
    %178 = arith.mulf %177, %176 : vector<8x256xf32>
    %179 = arith.maximumf %176, %178 : vector<8x256xf32>
    %c0_83 = arith.constant 0 : index
    %c0_84 = arith.constant 0 : index
    %180 = vector.load %arg18[%c0_83, %c0_84] : memref<8x8xbf16, #tpu.memory_space<vmem>>, vector<8x8xbf16>
    %c0_85 = arith.constant 0 : index
    %c0_86 = arith.constant 0 : index
    %181 = vector.load %arg19[%c0_85, %c0_86] : memref<8x1xf32, #tpu.memory_space<vmem>>, vector<8x1xf32>
    %c0_87 = arith.constant 0 : index
    %c0_88 = arith.constant 0 : index
    %182 = vector.load %arg20[%c0_87, %c0_88] : memref<8x72xbf16, #tpu.memory_space<vmem>>, vector<8x72xbf16>
    %c0_89 = arith.constant 0 : index
    %c0_90 = arith.constant 0 : index
    %183 = vector.load %arg21[%c0_89, %c0_90] : memref<8x1xf32, #tpu.memory_space<vmem>>, vector<8x1xf32>
    %c0_91 = arith.constant 0 : index
    %c0_92 = arith.constant 0 : index
    %184 = vector.load %arg22[%c0_91, %c0_92] : memref<8x8xbf16, #tpu.memory_space<vmem>>, vector<8x8xbf16>
    %c0_93 = arith.constant 0 : index
    %c0_94 = arith.constant 0 : index
    %185 = vector.load %arg23[%c0_93, %c0_94] : memref<8x1xf32, #tpu.memory_space<vmem>>, vector<8x1xf32>
    %c0_95 = arith.constant 0 : index
    %c0_96 = arith.constant 0 : index
    %186 = vector.load %arg24[%c0_95, %c0_96] : memref<2x4xf32, #tpu.memory_space<vmem>>, vector<2x4xf32>
    %c0_97 = arith.constant 0 : index
    %c0_98 = arith.constant 0 : index
    %187 = vector.load %arg25[%c0_97, %c0_98] : memref<1x4xf32, #tpu.memory_space<vmem>>, vector<1x4xf32>
    %c0_99 = arith.constant 0 : index
    %c0_100 = arith.constant 0 : index
    %188 = vector.load %arg26[%c0_99, %c0_100] : memref<1x4xf32, #tpu.memory_space<vmem>>, vector<1x4xf32>
    %c0_101 = arith.constant 0 : index
    %c0_102 = arith.constant 0 : index
    %189 = vector.load %arg27[%c0_101, %c0_102] : memref<4x3xf32, #tpu.memory_space<vmem>>, vector<4x3xf32>
    %c0_103 = arith.constant 0 : index
    %c0_104 = arith.constant 0 : index
    %190 = vector.load %arg29[%c0_103, %c0_104] : memref<2x1xf32, #tpu.memory_space<vmem>>, vector<2x1xf32>
    %c0_105 = arith.constant 0 : index
    %c0_106 = arith.constant 0 : index
    %191 = vector.load %arg30[%c0_105, %c0_106] : memref<2x1xf32, #tpu.memory_space<vmem>>, vector<2x1xf32>
    %c0_107 = arith.constant 0 : index
    %c0_108 = arith.constant 0 : index
    %192 = vector.load %arg31[%c0_107, %c0_108] : memref<8x2xf32, #tpu.memory_space<vmem>>, vector<8x2xf32>
    %193 = arith.truncf %147 : vector<8x256xf32> to vector<8x256xbf16>
    %cst_109 = arith.constant dense<0.000000e+00> : vector<8x256xf32>
    %194 = tpu.matmul %180, %193, %cst_109 {dimension_numbers = #tpu.dot_dimension_numbers<[1], [0], [0], [1], [0, 0, 1, 1], [], []>} : vector<8x8xbf16>, vector<8x256xbf16>, vector<8x256xf32> -> vector<8x256xf32>
    %195 = vector.broadcast %181 : vector<8x1xf32> to vector<8x256xf32>
    %196 = arith.addf %194, %195 : vector<8x256xf32>
    %cst_110 = arith.constant 0.00999999977 : f32
    %197 = vector.broadcast %cst_110 : f32 to vector<8x256xf32>
    %198 = arith.mulf %197, %196 : vector<8x256xf32>
    %199 = arith.maximumf %196, %198 : vector<8x256xf32>
    %200 = arith.truncf %179 : vector<8x256xf32> to vector<8x256xbf16>
    %cst_111 = arith.constant dense<0.000000e+00> : vector<8x256xf32>
    %201 = tpu.matmul %180, %200, %cst_111 {dimension_numbers = #tpu.dot_dimension_numbers<[1], [0], [0], [1], [0, 0, 1, 1], [], []>} : vector<8x8xbf16>, vector<8x256xbf16>, vector<8x256xf32> -> vector<8x256xf32>
    %202 = vector.broadcast %181 : vector<8x1xf32> to vector<8x256xf32>
    %203 = arith.addf %201, %202 : vector<8x256xf32>
    %cst_112 = arith.constant 0.00999999977 : f32
    %204 = vector.broadcast %cst_112 : f32 to vector<8x256xf32>
    %205 = arith.mulf %204, %203 : vector<8x256xf32>
    %206 = arith.maximumf %203, %205 : vector<8x256xf32>
    %cst_113 = arith.constant dense<0.000000e+00> : vector<8xf32>
    %207 = vector.multi_reduction <add>, %199, %cst_113 [1] : vector<8x256xf32> to vector<8xf32>
    %208 = vector.shape_cast %207 : vector<8xf32> to vector<8x1xf32>
    %cst_114 = arith.constant 3.906250e-03 : f32
    %209 = vector.broadcast %cst_114 : f32 to vector<8x1xf32>
    %210 = arith.mulf %208, %209 : vector<8x1xf32>
    %cst_115 = arith.constant dense<0.000000e+00> : vector<8xf32>
    %211 = vector.multi_reduction <add>, %206, %cst_115 [1] : vector<8x256xf32> to vector<8xf32>
    %212 = vector.shape_cast %211 : vector<8xf32> to vector<8x1xf32>
    %cst_116 = arith.constant 3.906250e-03 : f32
    %213 = vector.broadcast %cst_116 : f32 to vector<8x1xf32>
    %214 = arith.mulf %212, %213 : vector<8x1xf32>
    %215 = tpu.concatenate %210, %214 in 1 : vector<8x1xf32>, vector<8x1xf32> -> vector<8x2xf32>
    %cst_117 = arith.constant dense<0.000000e+00> : vector<8x4xf32>
    %216 = tpu.matmul %215, %186, %cst_117 {dimension_numbers = #tpu.dot_dimension_numbers<[1], [0], [0], [1], [0, 0, 1, 1], [], []>} : vector<8x2xf32>, vector<2x4xf32>, vector<8x4xf32> -> vector<8x4xf32>
    %217 = vector.broadcast %187 : vector<1x4xf32> to vector<8x4xf32>
    %218 = arith.mulf %216, %217 : vector<8x4xf32>
    %219 = vector.broadcast %188 : vector<1x4xf32> to vector<8x4xf32>
    %220 = arith.addf %218, %219 : vector<8x4xf32>
    %cst_118 = arith.constant 0.000000e+00 : f32
    %221 = vector.broadcast %cst_118 : f32 to vector<8x4xf32>
    %222 = arith.maximumf %220, %221 : vector<8x4xf32>
    %cst_119 = arith.constant dense<0.000000e+00> : vector<8x3xf32>
    %223 = tpu.matmul %222, %189, %cst_119 {dimension_numbers = #tpu.dot_dimension_numbers<[1], [0], [0], [1], [0, 0, 1, 1], [], []>} : vector<8x4xf32>, vector<4x3xf32>, vector<8x3xf32> -> vector<8x3xf32>
    %cst_120 = arith.constant dense<0xFF800000> : vector<8xf32>
    %224 = vector.multi_reduction <maximumf>, %223, %cst_120 [1] : vector<8x3xf32> to vector<8xf32>
    %225 = vector.shape_cast %224 : vector<8xf32> to vector<8x1xf32>
    %226 = vector.broadcast %225 : vector<8x1xf32> to vector<8x3xf32>
    %227 = arith.subf %223, %226 : vector<8x3xf32>
    %228 = math.exp %227 : vector<8x3xf32>
    %cst_121 = arith.constant dense<0.000000e+00> : vector<8xf32>
    %229 = vector.multi_reduction <add>, %228, %cst_121 [1] : vector<8x3xf32> to vector<8xf32>
    %230 = vector.shape_cast %229 : vector<8xf32> to vector<8x1xf32>
    %231 = vector.broadcast %230 : vector<8x1xf32> to vector<8x3xf32>
    %232 = arith.divf %228, %231 : vector<8x3xf32>
    %c0_122 = arith.constant 0 : index
    %c0_123 = arith.constant 0 : index
    %c0_124 = arith.constant 0 : index
    %233 = vector.load %arg28[%c0_122, %c0_123, %c0_124] : memref<3x2x8xf32, #tpu.memory_space<vmem>>, vector<1x2x8xf32>
    %234 = vector.shape_cast %233 : vector<1x2x8xf32> to vector<2x8xf32>
    %cst_125 = arith.constant 0.000000e+00 : f32
    %235 = vector.broadcast %cst_125 : f32 to vector<8x1xf32>
    %236 = vector.extract_strided_slice %215 {offsets = [0, 0], sizes = [8, 1], strides = [1, 1]} : vector<8x2xf32> to vector<8x1xf32>
    %237 = tpu.concatenate %235, %236 in 1 : vector<8x1xf32>, vector<8x1xf32> -> vector<8x2xf32>
    %cst_126 = arith.constant dense<0.000000e+00> : vector<2x2xf32>
    %238 = tpu.matmul %234, %237, %cst_126 {dimension_numbers = #tpu.dot_dimension_numbers<[1], [0], [0], [1], [0, 0, 1, 1], [], []>} : vector<2x8xf32>, vector<8x2xf32>, vector<2x2xf32> -> vector<2x2xf32>
    %c1_127 = arith.constant 1 : index
    %c0_128 = arith.constant 0 : index
    %c0_129 = arith.constant 0 : index
    %239 = vector.load %arg28[%c1_127, %c0_128, %c0_129] : memref<3x2x8xf32, #tpu.memory_space<vmem>>, vector<1x2x8xf32>
    %240 = vector.shape_cast %239 : vector<1x2x8xf32> to vector<2x8xf32>
    %cst_130 = arith.constant dense<0.000000e+00> : vector<2x2xf32>
    %241 = tpu.matmul %240, %215, %cst_130 {dimension_numbers = #tpu.dot_dimension_numbers<[1], [0], [0], [1], [0, 0, 1, 1], [], []>} : vector<2x8xf32>, vector<8x2xf32>, vector<2x2xf32> -> vector<2x2xf32>
    %242 = arith.addf %238, %241 : vector<2x2xf32>
    %c2_131 = arith.constant 2 : index
    %c0_132 = arith.constant 0 : index
    %c0_133 = arith.constant 0 : index
    %243 = vector.load %arg28[%c2_131, %c0_132, %c0_133] : memref<3x2x8xf32, #tpu.memory_space<vmem>>, vector<1x2x8xf32>
    %244 = vector.shape_cast %243 : vector<1x2x8xf32> to vector<2x8xf32>
    %cst_134 = arith.constant 0.000000e+00 : f32
    %245 = vector.broadcast %cst_134 : f32 to vector<8x1xf32>
    %246 = vector.extract_strided_slice %215 {offsets = [0, 1], sizes = [8, 1], strides = [1, 1]} : vector<8x2xf32> to vector<8x1xf32>
    %247 = tpu.concatenate %246, %245 in 1 : vector<8x1xf32>, vector<8x1xf32> -> vector<8x2xf32>
    %cst_135 = arith.constant dense<0.000000e+00> : vector<2x2xf32>
    %248 = tpu.matmul %244, %247, %cst_135 {dimension_numbers = #tpu.dot_dimension_numbers<[1], [0], [0], [1], [0, 0, 1, 1], [], []>} : vector<2x8xf32>, vector<8x2xf32>, vector<2x2xf32> -> vector<2x2xf32>
    %249 = arith.addf %242, %248 : vector<2x2xf32>
    %250 = vector.broadcast %190 : vector<2x1xf32> to vector<2x2xf32>
    %251 = arith.mulf %249, %250 : vector<2x2xf32>
    %252 = vector.broadcast %191 : vector<2x1xf32> to vector<2x2xf32>
    %253 = arith.addf %251, %252 : vector<2x2xf32>
    %cst_136 = arith.constant 0.000000e+00 : f32
    %254 = vector.broadcast %cst_136 : f32 to vector<2x2xf32>
    %255 = arith.maximumf %253, %254 : vector<2x2xf32>
    %cst_137 = arith.constant dense<0.000000e+00> : vector<8x2xf32>
    %256 = tpu.matmul %192, %255, %cst_137 {dimension_numbers = #tpu.dot_dimension_numbers<[1], [0], [0], [1], [0, 0, 1, 1], [], []>} : vector<8x2xf32>, vector<2x2xf32>, vector<8x2xf32> -> vector<8x2xf32>
    %cst_138 = arith.constant 0.000000e+00 : f32
    %257 = vector.broadcast %cst_138 : f32 to vector<8x2xf32>
    %258 = arith.subf %257, %256 : vector<8x2xf32>
    %259 = math.exp %258 : vector<8x2xf32>
    %cst_139 = arith.constant 1.000000e+00 : f32
    %260 = vector.broadcast %cst_139 : f32 to vector<8x2xf32>
    %261 = arith.addf %260, %259 : vector<8x2xf32>
    %cst_140 = arith.constant 1.000000e+00 : f32
    %262 = vector.broadcast %cst_140 : f32 to vector<8x2xf32>
    %263 = arith.divf %262, %261 : vector<8x2xf32>
    %264 = vector.extract_strided_slice %263 {offsets = [0, 0], sizes = [8, 1], strides = [1, 1]} : vector<8x2xf32> to vector<8x1xf32>
    %265 = vector.broadcast %264 : vector<8x1xf32> to vector<8x256xf32>
    %266 = arith.mulf %265, %199 : vector<8x256xf32>
    %267 = vector.extract_strided_slice %263 {offsets = [0, 1], sizes = [8, 1], strides = [1, 1]} : vector<8x2xf32> to vector<8x1xf32>
    %268 = vector.broadcast %267 : vector<8x1xf32> to vector<8x256xf32>
    %269 = arith.mulf %268, %206 : vector<8x256xf32>
    %270 = vector.extract_strided_slice %232 {offsets = [0, 1], sizes = [8, 1], strides = [1, 1]} : vector<8x3xf32> to vector<8x1xf32>
    %271 = vector.broadcast %270 : vector<8x1xf32> to vector<8x256xf32>
    %272 = arith.mulf %271, %266 : vector<8x256xf32>
    %273 = vector.extract_strided_slice %232 {offsets = [0, 2], sizes = [8, 1], strides = [1, 1]} : vector<8x3xf32> to vector<8x1xf32>
    %274 = vector.broadcast %273 : vector<8x1xf32> to vector<8x256xf32>
    %275 = arith.mulf %274, %269 : vector<8x256xf32>
    %276 = arith.addf %272, %275 : vector<8x256xf32>
    %277 = vector.extract_strided_slice %232 {offsets = [0, 0], sizes = [8, 1], strides = [1, 1]} : vector<8x3xf32> to vector<8x1xf32>
    %278 = vector.broadcast %277 : vector<8x1xf32> to vector<8x256xf32>
    %279 = arith.mulf %278, %266 : vector<8x256xf32>
    %280 = vector.extract_strided_slice %232 {offsets = [0, 1], sizes = [8, 1], strides = [1, 1]} : vector<8x3xf32> to vector<8x1xf32>
    %281 = vector.broadcast %280 : vector<8x1xf32> to vector<8x256xf32>
    %282 = arith.mulf %281, %269 : vector<8x256xf32>
    %283 = arith.addf %279, %282 : vector<8x256xf32>
    %c255_i32_141 = arith.constant 255 : i32
    %284 = tpu.dynamic_rotate %276 by %c255_i32_141 dim 1 : vector<8x256xf32>, i32 -> vector<8x256xf32>
    %c1_i32_142 = arith.constant 1 : i32
    %285 = tpu.dynamic_rotate %276 by %c1_i32_142 dim 1 : vector<8x256xf32>, i32 -> vector<8x256xf32>
    %286 = arith.select %3, %284, %285 : vector<8x256xi1>, vector<8x256xf32>
    %287 = arith.select %5, %285, %284 : vector<8x256xi1>, vector<8x256xf32>
    %c16_i32_143 = arith.constant 16 : i32
    %288 = tpu.dynamic_rotate %286 by %c16_i32_143 dim 1 : vector<8x256xf32>, i32 -> vector<8x256xf32>
    %c240_i32_144 = arith.constant 240 : i32
    %289 = tpu.dynamic_rotate %286 by %c240_i32_144 dim 1 : vector<8x256xf32>, i32 -> vector<8x256xf32>
    %290 = arith.select %7, %289, %288 : vector<8x256xi1>, vector<8x256xf32>
    %291 = arith.select %9, %288, %289 : vector<8x256xi1>, vector<8x256xf32>
    %c16_i32_145 = arith.constant 16 : i32
    %292 = tpu.dynamic_rotate %276 by %c16_i32_145 dim 1 : vector<8x256xf32>, i32 -> vector<8x256xf32>
    %c240_i32_146 = arith.constant 240 : i32
    %293 = tpu.dynamic_rotate %276 by %c240_i32_146 dim 1 : vector<8x256xf32>, i32 -> vector<8x256xf32>
    %294 = arith.select %7, %293, %292 : vector<8x256xi1>, vector<8x256xf32>
    %295 = arith.select %9, %292, %293 : vector<8x256xi1>, vector<8x256xf32>
    %c16_i32_147 = arith.constant 16 : i32
    %296 = tpu.dynamic_rotate %287 by %c16_i32_147 dim 1 : vector<8x256xf32>, i32 -> vector<8x256xf32>
    %c240_i32_148 = arith.constant 240 : i32
    %297 = tpu.dynamic_rotate %287 by %c240_i32_148 dim 1 : vector<8x256xf32>, i32 -> vector<8x256xf32>
    %298 = arith.select %7, %297, %296 : vector<8x256xi1>, vector<8x256xf32>
    %299 = arith.select %9, %296, %297 : vector<8x256xi1>, vector<8x256xf32>
    %300 = tpu.concatenate %290, %294, %298, %286, %276, %287, %291, %295, %299 in 0 : vector<8x256xf32>, vector<8x256xf32>, vector<8x256xf32>, vector<8x256xf32>, vector<8x256xf32>, vector<8x256xf32>, vector<8x256xf32>, vector<8x256xf32>, vector<8x256xf32> -> vector<72x256xf32>
    %301 = arith.truncf %300 : vector<72x256xf32> to vector<72x256xbf16>
    %cst_149 = arith.constant dense<0.000000e+00> : vector<8x256xf32>
    %302 = tpu.matmul %182, %301, %cst_149 {dimension_numbers = #tpu.dot_dimension_numbers<[1], [0], [0], [1], [0, 0, 1, 1], [], []>} : vector<8x72xbf16>, vector<72x256xbf16>, vector<8x256xf32> -> vector<8x256xf32>
    %303 = vector.broadcast %183 : vector<8x1xf32> to vector<8x256xf32>
    %304 = arith.addf %302, %303 : vector<8x256xf32>
    %cst_150 = arith.constant 0.00999999977 : f32
    %305 = vector.broadcast %cst_150 : f32 to vector<8x256xf32>
    %306 = arith.mulf %305, %304 : vector<8x256xf32>
    %307 = arith.maximumf %304, %306 : vector<8x256xf32>
    %308 = arith.truncf %307 : vector<8x256xf32> to vector<8x256xbf16>
    %cst_151 = arith.constant dense<0.000000e+00> : vector<8x256xf32>
    %309 = tpu.matmul %184, %308, %cst_151 {dimension_numbers = #tpu.dot_dimension_numbers<[1], [0], [0], [1], [0, 0, 1, 1], [], []>} : vector<8x8xbf16>, vector<8x256xbf16>, vector<8x256xf32> -> vector<8x256xf32>
    %310 = vector.broadcast %185 : vector<8x1xf32> to vector<8x256xf32>
    %311 = arith.addf %309, %310 : vector<8x256xf32>
    %312 = arith.addf %311, %147 : vector<8x256xf32>
    %cst_152 = arith.constant 0.00999999977 : f32
    %313 = vector.broadcast %cst_152 : f32 to vector<8x256xf32>
    %314 = arith.mulf %313, %312 : vector<8x256xf32>
    %315 = arith.maximumf %312, %314 : vector<8x256xf32>
    %c255_i32_153 = arith.constant 255 : i32
    %316 = tpu.dynamic_rotate %283 by %c255_i32_153 dim 1 : vector<8x256xf32>, i32 -> vector<8x256xf32>
    %c1_i32_154 = arith.constant 1 : i32
    %317 = tpu.dynamic_rotate %283 by %c1_i32_154 dim 1 : vector<8x256xf32>, i32 -> vector<8x256xf32>
    %318 = arith.select %3, %316, %317 : vector<8x256xi1>, vector<8x256xf32>
    %319 = arith.select %5, %317, %316 : vector<8x256xi1>, vector<8x256xf32>
    %c16_i32_155 = arith.constant 16 : i32
    %320 = tpu.dynamic_rotate %318 by %c16_i32_155 dim 1 : vector<8x256xf32>, i32 -> vector<8x256xf32>
    %c240_i32_156 = arith.constant 240 : i32
    %321 = tpu.dynamic_rotate %318 by %c240_i32_156 dim 1 : vector<8x256xf32>, i32 -> vector<8x256xf32>
    %322 = arith.select %7, %321, %320 : vector<8x256xi1>, vector<8x256xf32>
    %323 = arith.select %9, %320, %321 : vector<8x256xi1>, vector<8x256xf32>
    %c16_i32_157 = arith.constant 16 : i32
    %324 = tpu.dynamic_rotate %283 by %c16_i32_157 dim 1 : vector<8x256xf32>, i32 -> vector<8x256xf32>
    %c240_i32_158 = arith.constant 240 : i32
    %325 = tpu.dynamic_rotate %283 by %c240_i32_158 dim 1 : vector<8x256xf32>, i32 -> vector<8x256xf32>
    %326 = arith.select %7, %325, %324 : vector<8x256xi1>, vector<8x256xf32>
    %327 = arith.select %9, %324, %325 : vector<8x256xi1>, vector<8x256xf32>
    %c16_i32_159 = arith.constant 16 : i32
    %328 = tpu.dynamic_rotate %319 by %c16_i32_159 dim 1 : vector<8x256xf32>, i32 -> vector<8x256xf32>
    %c240_i32_160 = arith.constant 240 : i32
    %329 = tpu.dynamic_rotate %319 by %c240_i32_160 dim 1 : vector<8x256xf32>, i32 -> vector<8x256xf32>
    %330 = arith.select %7, %329, %328 : vector<8x256xi1>, vector<8x256xf32>
    %331 = arith.select %9, %328, %329 : vector<8x256xi1>, vector<8x256xf32>
    %332 = tpu.concatenate %322, %326, %330, %318, %283, %319, %323, %327, %331 in 0 : vector<8x256xf32>, vector<8x256xf32>, vector<8x256xf32>, vector<8x256xf32>, vector<8x256xf32>, vector<8x256xf32>, vector<8x256xf32>, vector<8x256xf32>, vector<8x256xf32> -> vector<72x256xf32>
    %333 = arith.truncf %332 : vector<72x256xf32> to vector<72x256xbf16>
    %cst_161 = arith.constant dense<0.000000e+00> : vector<8x256xf32>
    %334 = tpu.matmul %182, %333, %cst_161 {dimension_numbers = #tpu.dot_dimension_numbers<[1], [0], [0], [1], [0, 0, 1, 1], [], []>} : vector<8x72xbf16>, vector<72x256xbf16>, vector<8x256xf32> -> vector<8x256xf32>
    %335 = vector.broadcast %183 : vector<8x1xf32> to vector<8x256xf32>
    %336 = arith.addf %334, %335 : vector<8x256xf32>
    %cst_162 = arith.constant 0.00999999977 : f32
    %337 = vector.broadcast %cst_162 : f32 to vector<8x256xf32>
    %338 = arith.mulf %337, %336 : vector<8x256xf32>
    %339 = arith.maximumf %336, %338 : vector<8x256xf32>
    %340 = arith.truncf %339 : vector<8x256xf32> to vector<8x256xbf16>
    %cst_163 = arith.constant dense<0.000000e+00> : vector<8x256xf32>
    %341 = tpu.matmul %184, %340, %cst_163 {dimension_numbers = #tpu.dot_dimension_numbers<[1], [0], [0], [1], [0, 0, 1, 1], [], []>} : vector<8x8xbf16>, vector<8x256xbf16>, vector<8x256xf32> -> vector<8x256xf32>
    %342 = vector.broadcast %185 : vector<8x1xf32> to vector<8x256xf32>
    %343 = arith.addf %341, %342 : vector<8x256xf32>
    %344 = arith.addf %343, %179 : vector<8x256xf32>
    %cst_164 = arith.constant 0.00999999977 : f32
    %345 = vector.broadcast %cst_164 : f32 to vector<8x256xf32>
    %346 = arith.mulf %345, %344 : vector<8x256xf32>
    %347 = arith.maximumf %344, %346 : vector<8x256xf32>
    %348 = arith.addf %315, %10 : vector<8x256xf32>
    %349 = arith.addf %347, %11 : vector<8x256xf32>
    %350 = tpu.concatenate %348, %349 in 0 : vector<8x256xf32>, vector<8x256xf32> -> vector<16x256xf32>
    %c0_165 = arith.constant 0 : index
    %c0_166 = arith.constant 0 : index
    %351 = vector.load %arg32[%c0_165, %c0_166] : memref<16x256xf32, #tpu.memory_space<vmem>>, vector<16x256xf32>
    tpu.vector_store %arg32[%c0_165, %c0_166], %350 {strides = array<i32>} : memref<16x256xf32, #tpu.memory_space<vmem>>, vector<16x256xf32>,
    return
  }
  func.func @transform_0(%arg0: i32) -> (i32, i32) {
    %c0_i32 = arith.constant 0 : i32
    %c0_i32_0 = arith.constant 0 : i32
    return %arg0, %c0_i32 : i32, i32
  }
  func.func @transform_1(%arg0: i32) -> (i32, i32) {
    %c0_i32 = arith.constant 0 : i32
    %c0_i32_0 = arith.constant 0 : i32
    %c0_i32_1 = arith.constant 0 : i32
    return %c0_i32, %c0_i32_0 : i32, i32
  }
  func.func @transform_2(%arg0: i32) -> (i32, i32) {
    %c0_i32 = arith.constant 0 : i32
    %c0_i32_0 = arith.constant 0 : i32
    %c0_i32_1 = arith.constant 0 : i32
    return %c0_i32, %c0_i32_0 : i32, i32
  }
  func.func @transform_3(%arg0: i32) -> (i32, i32) {
    %c0_i32 = arith.constant 0 : i32
    %c0_i32_0 = arith.constant 0 : i32
    %c0_i32_1 = arith.constant 0 : i32
    return %c0_i32, %c0_i32_0 : i32, i32
  }
  func.func @transform_4(%arg0: i32) -> (i32, i32) {
    %c0_i32 = arith.constant 0 : i32
    %c0_i32_0 = arith.constant 0 : i32
    %c0_i32_1 = arith.constant 0 : i32
    return %c0_i32, %c0_i32_0 : i32, i32
  }
  func.func @transform_5(%arg0: i32) -> (i32, i32) {
    %c0_i32 = arith.constant 0 : i32
    %c0_i32_0 = arith.constant 0 : i32
    %c0_i32_1 = arith.constant 0 : i32
    return %c0_i32, %c0_i32_0 : i32, i32
  }
  func.func @transform_6(%arg0: i32) -> (i32, i32) {
    %c0_i32 = arith.constant 0 : i32
    %c0_i32_0 = arith.constant 0 : i32
    %c0_i32_1 = arith.constant 0 : i32
    return %c0_i32, %c0_i32_0 : i32, i32
  }
  func.func @transform_7(%arg0: i32) -> (i32, i32) {
    %c0_i32 = arith.constant 0 : i32
    %c0_i32_0 = arith.constant 0 : i32
    %c0_i32_1 = arith.constant 0 : i32
    return %c0_i32, %c0_i32_0 : i32, i32
  }
  func.func @transform_8(%arg0: i32) -> (i32, i32) {
    %c0_i32 = arith.constant 0 : i32
    %c0_i32_0 = arith.constant 0 : i32
    %c0_i32_1 = arith.constant 0 : i32
    return %c0_i32, %c0_i32_0 : i32, i32
  }
  func.func @transform_9(%arg0: i32) -> (i32, i32) {
    %c0_i32 = arith.constant 0 : i32
    %c0_i32_0 = arith.constant 0 : i32
    %c0_i32_1 = arith.constant 0 : i32
    return %c0_i32, %c0_i32_0 : i32, i32
  }
  func.func @transform_10(%arg0: i32) -> (i32, i32) {
    %c0_i32 = arith.constant 0 : i32
    %c0_i32_0 = arith.constant 0 : i32
    %c0_i32_1 = arith.constant 0 : i32
    return %c0_i32, %c0_i32_0 : i32, i32
  }
  func.func @transform_11(%arg0: i32) -> (i32, i32) {
    %c0_i32 = arith.constant 0 : i32
    %c0_i32_0 = arith.constant 0 : i32
    %c0_i32_1 = arith.constant 0 : i32
    return %c0_i32, %c0_i32_0 : i32, i32
  }
  func.func @transform_12(%arg0: i32) -> (i32, i32) {
    %c0_i32 = arith.constant 0 : i32
    %c0_i32_0 = arith.constant 0 : i32
    %c0_i32_1 = arith.constant 0 : i32
    return %c0_i32, %c0_i32_0 : i32, i32
  }
  func.func @transform_13(%arg0: i32) -> (i32, i32, i32) {
    %c0_i32 = arith.constant 0 : i32
    %c0_i32_0 = arith.constant 0 : i32
    %c0_i32_1 = arith.constant 0 : i32
    %c0_i32_2 = arith.constant 0 : i32
    return %c0_i32, %c0_i32_0, %c0_i32_1 : i32, i32, i32
  }
  func.func @transform_14(%arg0: i32) -> (i32, i32) {
    %c0_i32 = arith.constant 0 : i32
    %c0_i32_0 = arith.constant 0 : i32
    %c0_i32_1 = arith.constant 0 : i32
    return %c0_i32, %c0_i32_0 : i32, i32
  }
  func.func @transform_15(%arg0: i32) -> (i32, i32) {
    %c0_i32 = arith.constant 0 : i32
    %c0_i32_0 = arith.constant 0 : i32
    %c0_i32_1 = arith.constant 0 : i32
    return %c0_i32, %c0_i32_0 : i32, i32
  }
  func.func @transform_16(%arg0: i32) -> (i32, i32) {
    %c0_i32 = arith.constant 0 : i32
    %c0_i32_0 = arith.constant 0 : i32
    %c0_i32_1 = arith.constant 0 : i32
    return %c0_i32, %c0_i32_0 : i32, i32
  }
  func.func @transform_17(%arg0: i32) -> (i32, i32) {
    %c0_i32 = arith.constant 0 : i32
    %c0_i32_0 = arith.constant 0 : i32
    %c0_i32_1 = arith.constant 0 : i32
    return %c0_i32, %c0_i32_0 : i32, i32
  }
  func.func @transform_18(%arg0: i32) -> (i32, i32) {
    %c0_i32 = arith.constant 0 : i32
    %c0_i32_0 = arith.constant 0 : i32
    %c0_i32_1 = arith.constant 0 : i32
    return %c0_i32, %c0_i32_0 : i32, i32
  }
  func.func @transform_19(%arg0: i32) -> (i32, i32) {
    %c0_i32 = arith.constant 0 : i32
    %c0_i32_0 = arith.constant 0 : i32
    %c0_i32_1 = arith.constant 0 : i32
    return %c0_i32, %c0_i32_0 : i32, i32
  }
  func.func @transform_20(%arg0: i32) -> (i32, i32) {
    %c0_i32 = arith.constant 0 : i32
    %c0_i32_0 = arith.constant 0 : i32
    %c0_i32_1 = arith.constant 0 : i32
    return %c0_i32, %c0_i32_0 : i32, i32
  }
  func.func @transform_21(%arg0: i32) -> (i32, i32) {
    %c0_i32 = arith.constant 0 : i32
    %c0_i32_0 = arith.constant 0 : i32
    %c0_i32_1 = arith.constant 0 : i32
    return %c0_i32, %c0_i32_0 : i32, i32
  }
  func.func @transform_22(%arg0: i32) -> (i32, i32) {
    %c0_i32 = arith.constant 0 : i32
    %c0_i32_0 = arith.constant 0 : i32
    %c0_i32_1 = arith.constant 0 : i32
    return %c0_i32, %c0_i32_0 : i32, i32
  }
  func.func @transform_23(%arg0: i32) -> (i32, i32) {
    %c0_i32 = arith.constant 0 : i32
    %c0_i32_0 = arith.constant 0 : i32
    %c0_i32_1 = arith.constant 0 : i32
    return %c0_i32, %c0_i32_0 : i32, i32
  }
  func.func @transform_24(%arg0: i32) -> (i32, i32) {
    %c0_i32 = arith.constant 0 : i32
    %c0_i32_0 = arith.constant 0 : i32
    %c0_i32_1 = arith.constant 0 : i32
    return %c0_i32, %c0_i32_0 : i32, i32
  }
  func.func @transform_25(%arg0: i32) -> (i32, i32) {
    %c0_i32 = arith.constant 0 : i32
    %c0_i32_0 = arith.constant 0 : i32
    %c0_i32_1 = arith.constant 0 : i32
    return %c0_i32, %c0_i32_0 : i32, i32
  }
  func.func @transform_26(%arg0: i32) -> (i32, i32) {
    %c0_i32 = arith.constant 0 : i32
    %c0_i32_0 = arith.constant 0 : i32
    %c0_i32_1 = arith.constant 0 : i32
    return %c0_i32, %c0_i32_0 : i32, i32
  }
  func.func @transform_27(%arg0: i32) -> (i32, i32, i32) {
    %c0_i32 = arith.constant 0 : i32
    %c0_i32_0 = arith.constant 0 : i32
    %c0_i32_1 = arith.constant 0 : i32
    %c0_i32_2 = arith.constant 0 : i32
    return %c0_i32, %c0_i32_0, %c0_i32_1 : i32, i32, i32
  }
  func.func @transform_28(%arg0: i32) -> (i32, i32) {
    %c0_i32 = arith.constant 0 : i32
    %c0_i32_0 = arith.constant 0 : i32
    %c0_i32_1 = arith.constant 0 : i32
    return %c0_i32, %c0_i32_0 : i32, i32
  }
  func.func @transform_29(%arg0: i32) -> (i32, i32) {
    %c0_i32 = arith.constant 0 : i32
    %c0_i32_0 = arith.constant 0 : i32
    %c0_i32_1 = arith.constant 0 : i32
    return %c0_i32, %c0_i32_0 : i32, i32
  }
  func.func @transform_30(%arg0: i32) -> (i32, i32) {
    %c0_i32 = arith.constant 0 : i32
    %c0_i32_0 = arith.constant 0 : i32
    %c0_i32_1 = arith.constant 0 : i32
    return %c0_i32, %c0_i32_0 : i32, i32
  }
  func.func @transform_31(%arg0: i32) -> (i32, i32) {
    %c0_i32 = arith.constant 0 : i32
    %c0_i32_0 = arith.constant 0 : i32
    return %arg0, %c0_i32 : i32, i32
  }
}

</mosaic_0001>

<bundles_post_ra>
// kernel: forward.1
= control target key start
LH: loop header
LB: loop body
LE: loop exit
PB: predicated region body
PF: predicated region fallthrough
CT: control target
= control target key end

     0   :  { %s3609_s6 = smov 1   ;;  %s3610_s10 = smov 2   ;;  %s4566_s0 = inlined_call_operand.smem [shape: u32[32], index: -1, kind: input, shape index: {}] }
   0x1   :  { %s3657_s5 = sld [smem:[%s4566_s0]]   ;;  %s3611_s14 = smov 3  }
   0x2   :  { %s3662_s9 = sld [smem:[%s4566_s0 + %s3609_s6]]   ;;  %s3612_s18 = smov 4  }
   0x3   :  { %s3667_s13 = sld [smem:[%s4566_s0 + %s3610_s10]]   ;;  %s3613_s22 = smov 5  }
   0x4   :  { %s3672_s17 = sld [smem:[%s4566_s0 + %s3611_s14]]   ;;  %s3614_s26 = smov 6  }
   0x5   :  { %s3677_s21 = sld [smem:[%s4566_s0 + %s3612_s18]]   ;;  %s3615_s30 = smov 7  }
   0x6   :  { %s3682_s25 = sld [smem:[%s4566_s0 + %s3613_s22]]   ;;  %s3616_s4 = smov 8  }
   0x7   :  { %s3687_s29 = sld [smem:[%s4566_s0 + %s3614_s26]]   ;;  %s3617_s10 = smov 9  }
   0x8   :  { %s3692_s3 = sld [smem:[%s4566_s0 + %s3615_s30]]   ;;  %s3618_s15 = smov 10  }
   0x9   :  { %s3697_s8 = sld [smem:[%s4566_s0 + %s3616_s4]]   ;;  %s3619_s20 = smov 11  }
   0xa   :  { %s3702_s14 = sld [smem:[%s4566_s0 + %s3617_s10]]   ;;  %s3620_s26 = smov 12  }
   0xb   :  { %s3707_s19 = sld [smem:[%s4566_s0 + %s3618_s15]]   ;;  %s3621_s1 = smov 13  }
   0xc   :  { %4579 = sst [smem:[#allocation2_spill]] %s3682_s25  ;;  %s3622_s7 = smov 14  }
   0xd   :  { %s3712_s24 = sld [smem:[%s4566_s0 + %s3619_s20]]   ;;  %s3623_s15 = smov 15  }
   0xe   :  { %4580 = sst [smem:[#allocation3_spill]] %s3692_s3  ;;  %s3624_s22 = smov 16  }
   0xf   :  { %4581 = sst [smem:[#allocation4_spill]] %s3697_s8  ;;  %s3625_s28 = smov 17  }
  0x10   :  { %s3717_s30 = sld [smem:[%s4566_s0 + %s3620_s26]]  }
  0x11   :  { %s3722_s6 = sld [smem:[%s4566_s0 + %s3621_s1]]  }
  0x12   :  { %s3727_s12 = sld [smem:[%s4566_s0 + %s3622_s7]]   ;;  %s3626_s7 = smov 18  }
  0x13   :  { %s3732_s20 = sld [smem:[%s4566_s0 + %s3623_s15]]   ;;  %s3627_s15 = smov 19  }
  0x14   :  { %s3737_s27 = sld [smem:[%s4566_s0 + %s3624_s22]]   ;;  %s3628_s22 = smov 20  }
  0x15   :  { %s3742_s4 = sld [smem:[%s4566_s0 + %s3625_s28]]   ;;  %s3629_s28 = smov 21  }
  0x16   :  { %s3747_s3 = sld [smem:[%s4566_s0 + %s3626_s7]]   ;;  %s3630_s7 = smov 22  }
  0x17   :  { %s3752_s8 = sld [smem:[%s4566_s0 + %s3627_s15]]   ;;  %s3631_s15 = smov 23  }
  0x18   :  { %s3757_s25 = sld [smem:[%s4566_s0 + %s3628_s22]]   ;;  %s3632_s22 = smov 24  }
  0x1b   :  { %4582 = sst [smem:[#allocation5_spill]] %s3742_s4 }
  0x1c   :  { %4583 = sst [smem:[#allocation6_spill]] %s3747_s3 }
  0x1d   :  { %4584 = sst [smem:[#allocation7_spill]] %s3752_s8 }
  0x1e   :  { %4585 = sst [smem:[#allocation8_spill]] %s3757_s25 }
  0x1f   :  { %s3762_s4 = sld [smem:[%s4566_s0 + %s3629_s28]]   ;;  %s3633_s28 = smov 25  }
  0x20   :  { %s3767_s3 = sld [smem:[%s4566_s0 + %s3630_s7]]   ;;  %s3634_s7 = smov 26  }
  0x21   :  { %s3772_s8 = sld [smem:[%s4566_s0 + %s3631_s15]]   ;;  %s3635_s15 = smov 27  }
  0x22   :  { %s3777_s25 = sld [smem:[%s4566_s0 + %s3632_s22]]   ;;  %s3636_s22 = smov 28  }
  0x25   :  { %4586 = sst [smem:[#allocation9_spill]] %s3762_s4 }
  0x26   :  { %4587 = sst [smem:[#allocation10_spill]] %s3767_s3 }
  0x27   :  { %4588 = sst [smem:[#allocation11_spill]] %s3772_s8 }
  0x28   :  { %4589 = sst [smem:[#allocation12_spill]] %s3777_s25 }
  0x29   :  { %s3782_s4 = sld [smem:[%s4566_s0 + %s3633_s28]]   ;;  %s3637_s28 = smov 29  }
  0x2a   :  { %s3787_s3 = sld [smem:[%s4566_s0 + %s3634_s7]]   ;;  %s3638_s7 = smov 30  }
  0x2b   :  { %s3792_s8 = sld [smem:[%s4566_s0 + %s3635_s15]]   ;;  %s3639_s15 = smov 31  }
  0x2c   :  { %s3797_s25 = sld [smem:[%s4566_s0 + %s3636_s22]]   ;;  %s3814_s22 = smov 0  }
  0x2f   :  { %4590 = sst [smem:[#allocation13_spill]] %s3782_s4 }
  0x30   :  { %4591 = sst [smem:[#allocation14_spill]] %s3787_s3 }
  0x31   :  { %4592 = sst [smem:[#allocation15_spill]] %s3792_s8 }
  0x32   :  { %s3802_s4 = sld [smem:[%s4566_s0 + %s3637_s28]]  }
  0x33   :  { %s3807_s3 = sld [smem:[%s4566_s0 + %s3638_s7]]  }
  0x34   :  { %s3812_s8 = sld [smem:[%s4566_s0 + %s3639_s15]]  }
  0x35 LB: > { %s3207_s23 = sadd.s32 4294967295, %s3607_s22   ;;  %p3211_p0 = scmp.ge.s32.totalorder %s3607_s22, 1  ;;  %s3607_s22 = sphi %s3814_s22, %s73_s22  }
  0x36   : > { %p871_p1 = scmp.lt.s32.totalorder %s3607_s22, 3 }
  0x38   : > { %p872_p2 = pnand %p3211_p0, %p871_p1 }
  0x39   : > { %s3212_s26 = sshll.u32 (!%p872_p2), %s3207_s23, 1  ;;  %s3643_s1 = smov (!%p872_p2), 1  }
  0x3a   : > { %875 = sbr.rel (%p872_p2) target bundleno = 4326 (0x10e6), region = 144  ;;  %p954_p3 = scmp.lt.s32.totalorder (!%p872_p2), %s3212_s26, 3 }
  0x3b   : > { %s3644_s2 = smov (!%p872_p2), 127   ;;  %s3647_s7 = smov (!%p872_p2), 16  }
  0x3c   : > { %s3648_s10 = smov (!%p872_p2), 112   ;;  %s4595_s11 = sld [smem:[#allocation2_spill]] (!%p872_p2) }
  0x3d   : > { %s4596_s15 = sld [smem:[#allocation4_spill]] (!%p872_p2) }
  0x3e   : > { %s4597_s16 = sld [smem:[#allocation6_spill]] (!%p872_p2) }
  0x3f   : > { %v3640_v0 = vmov 0   ;;  %v985_v1 = vld [vmem:[%s3677_s21] sm:$0xff]  ;;  %s4640_s26 = smov (!%p954_p3, %s3212_s26), 3  ;;  %vm1008_vm0 = vcmask 1043456   ;;  %vm1004_vm1 = vcmask 64512   ;;  %v3641_v36 = vmov 0.0  }
  0x40   : > { %1047 = vmatprep.mubr.bf16.mxu0 %v3640_v0  ;;  %1100 = vmatprep.mubr.bf16.mxu1 %v3640_v0  ;;  %s3276_s0 = sshll.u32 %s4640_s26, 4  ;;  %v984_v12 = vld [vmem:[%s3672_s17] sm:$0xf]  ;;  %vm4572_vm2 = vcmask 1041408   ;;  %vm4573_vm3 = vmmov 0   ;;  %vm4571_vm4 = vcmask 7168  }
  0x41   : > { %3410 = vset.pattern.permute.xlu0 %v3640_v0  ;;  %3411 = vset.pattern.permute.xlu1 %v3640_v0  ;;  %s3833_s28 = scalar_lea.vmem %s3657_s5, %s3276_s0  ;;  %v990_v37 = vld [vmem:[%s3702_s14] sm:$0x3]  ;;  %vm4570_vm5 = vcmask 15360   ;;  %v3228_v43 = vld [vmem:[%s3722_s6 + $0x2] sm:$0x3]  ;;  %vm4569_vm6 = vcmask 31744   ;;  %vm3906_vm7 = vmneg %vm4571_vm4 }
  0x42   : > { %1001 = vperm.xlu0 %3410, %v985_v1   ;;  %v3836_v2 = vld [vmem:[%s3833_s28 + $0x8] sm:$0xff]  ;;  %v3839_v3 = vld [vmem:[%s3833_s28 + $0x18] sm:$0xff]  ;;  %v3842_v4 = vld [vmem:[%s3833_s28] sm:$0xff]  ;;  %vm4568_vm8 = vcmask 23552   ;;  %s4598_s18 = sld [smem:[#allocation3_spill]] }
  0x43   : > { %v998_v5 = vpack.c.bf16 %v3836_v2, %v3836_v2  ;;  %v1061_v6 = vpack.c.bf16 %v3839_v3, %v3839_v3  ;;  %v997_v7 = vpack.c.bf16 %v3842_v4, %v3842_v4  ;;  %v3851_v8 = vld [vmem:[%s3833_s28 + $0x10] sm:$0xff]  ;;  %v993_v44 = vld [vmem:[%s3717_s30] sm:$0xf]  ;;  %v3233_v48 = vld [vmem:[%s3722_s6 + $0x4] sm:$0x3]  ;;  %s4599_s23 = sld [smem:[#allocation5_spill]] }
  0x44   : > { %v1060_v9 = vpack.c.bf16 %v3851_v8, %v3851_v8  ;;  %v994_v45 = vld [vmem:[%s3727_s12] sm:$0x3] }
  0x45   : > { %3218 = vmatprep.subr.msk.bf16.mxu0 %vm1008_vm0, %v998_v5  ;;  %3220 = vmatprep.subr.msk.bf16.mxu1 %vm1008_vm0, %v1061_v6  ;;  %v1010_v10 = vsel %vm1008_vm0, %v997_v7, 0  ;;  %v995_v46 = vld [vmem:[%s3732_s20] sm:$0x3] }
  0x46   : > { %1030 = vmatpush1.bf16.msra.mxu0 %v1010_v10  ;;  %v1063_v11 = vsel %vm1008_vm0, %v1060_v9, 0  ;;  %v3224_v50 = vld [vmem:[%s3707_s19] ss:$0 sm:$0xff] }
  0x47   : > { %1083 = vmatpush1.bf16.msra.mxu1 %v1063_v11  ;;  %3302 = vmatprep.subr.mxu0 %v3641_v36  ;;  %v3225_v51 = vld [vmem:[%s3712_s24] ss:$0 sm:$0xff] }
  0x48   : > { %3307 = vmatprep.subr.mxu1 %v3641_v36  ;;  %v1305_v58 = vld [vmem:[%s3722_s6] sm:$0x3] }
  0x49   : > { %3219 = vmatmul.mubr.msk.bf16.vlgmr.msra.gmra.mxu0 %vm1004_vm1, %v984_v12 }
  0x4a   : > { %3221 = vmatmul.mubr.msk.bf16.vlgmr.msra.gmra.mxu1 %vm1004_vm1, %v984_v12  ;;  %3303 = vmatpush3.msk.msra.mxu0 %vm4572_vm2, %v990_v37 }
  0x4b   : > { %3304 = vmatprep.mubr.msk.f32.mxu0 %vm4573_vm3, %v3641_v36  ;;  %3312 = vmatprep.subr.mxu0 %v3641_v36 }
  0x4c   : > { %3309 = vmatprep.mubr.msk.f32.mxu1 %vm4573_vm3, %v3641_v36  ;;  %3308 = vmatpush3.msk.msra.mxu1 %vm1008_vm0, %v993_v44 }
  0x4d   : > { %3317 = vmatprep.subr.mxu1 %v3641_v36 }
  0xbd   : > { %v1002_v13 = vpop.permute.xlu0 %1001 }
 0x109   : > { %v1049_v14 = vpop.f32.mrf.mxu0 }
 0x10a   : > { %v1050_v15 = vadd.f32 %v1049_v14, %v1002_v13  ;;  %v1102_v16 = vpop.f32.mrf.mxu1 }
 0x10b   : > { %v1103_v17 = vadd.f32 %v1102_v16, %v1002_v13  ;;  %v1051_v18 = vpop.f32.mrf.mxu0  ;;  %v996_v16 = vld [vmem:[%s3737_s27] sm:$0xff] }
 0x10c   : > { %v1056_v19 = vmul.f32 0.01, %v1050_v15  ;;  %v1052_v20 = vadd.f32 %v1051_v18, %v1002_v13  ;;  %v1104_v21 = vpop.f32.mrf.mxu1 }
 0x10d   : > { %v1109_v22 = vmul.f32 0.01, %v1103_v17  ;;  %v1105_v23 = vadd.f32 %v1104_v21, %v1002_v13  ;;  %v1053_v24 = vpop.f32.mrf.mxu0 }
 0x10e   : > { %v1057_v25 = vmul.f32 0.01, %v1052_v20  ;;  %v1106_v26 = vpop.f32.mrf.mxu1  ;;  %v3862_v29 = vmax.f32 %v1050_v15, %v1056_v19 }
 0x10f   : > { %v1110_v27 = vmul.f32 0.01, %v1105_v23  ;;  %v1054_v28 = vpop.f32.mrf.mxu0  ;;  %v3866_v32 = vmax.f32 %v1103_v17, %v1109_v22  ;;  %v3645_v22 = vmov 2  }
 0x110   : > { %v3864_v30 = vmax.f32 %v1052_v20, %v1057_v25  ;;  %v1107_v31 = vpop.f32.mrf.mxu1 }
 0x111   : > { %v3868_v33 = vmax.f32 %v1105_v23, %v1110_v27 }
 0x112   : > { %v1113_v34 = vadd.f32 %v3864_v30, %v3862_v29 }
 0x113   : > { %v1117_v35 = vadd.f32 %v3868_v33, %v3866_v32 }
 0x114   : > { %1114 = vadd.xlane.f32.xlu0 %v1113_v34  ;;  %v3646_v34 = vmov 1  }
 0x115   : > { %1118 = vadd.xlane.f32.xlu1 %v1117_v35 }
 0x19d   : > { %v1115_v38 = vpop.xlane.xlu0 %1114 }
 0x19e   : > { %v1119_v39 = vpop.xlane.xlu1 %1118  ;;  %v1116_v40 = vmul.f32 0.00390625, %v1115_v38 }
 0x19f   : > { %v1120_v41 = vmul.f32 0.00390625, %v1119_v39 }
 0x1a1   : > { %v1122_v42 = vsel %vm4571_vm4, %v1116_v40, %v1120_v41 }
 0x1a2   : > { %1306 = vrot.lane.b32.xlu1 %v1122_v42, %s3643_s1  ;;  %3305 = vmatmul.mubr.msk.f32.vlgmr.msra.gmra.mxu0 %vm4570_vm5, %v1122_v42 }
 0x1a3   : > { %3313 = vmatpush3.msra.mxu0 %v1122_v42  ;;  %3314 = vmatprep.mubr.msk.f32.mxu0 %vm4573_vm3, %v3641_v36 }
 0x1a4   : > { %3322 = vmatprep.subr.mxu0 %v3641_v36 }
 0x1a6   : > { %1460 = vrot.lane.b32.xlu1 %v1122_v42, %s3644_s2  ;;  %3315 = vmatmul.mubr.msk.f32.vlgmr.msra.gmra.mxu0 %vm1004_vm1, %v3228_v43 }
 0x1a7   : > { %3324 = vmatprep.mubr.msk.f32.mxu0 %vm4573_vm3, %v3641_v36 }
 0x1aa   : > { %1540 = vperm.xlu1 %3411, %v994_v45  }
 0x1ae   : > { %1546 = vperm.xlu1 %3411, %v995_v46  }
 0x1b2   : > { %3413 = vset.pattern.permute.xlu1 %v3645_v22 }
 0x214   : > { %v1307_v47 = vpop.permute.xlu1 %1306 }
 0x218   : > { %v1461_v49 = vpop.permute.xlu1 %1460 }
 0x219   : > { %3323 = vmatpush3.msk.msra.mxu0 %vm4571_vm4, %v1461_v49 }
 0x21a   : > { %3325 = vmatmul.mubr.msk.f32.vlgmr.msra.gmra.mxu0 %vm1004_vm1, %v3233_v48 }
 0x21b   : > { %1798 = vmatprep.mubr.bf16.mxu0 %v3640_v0 }
 0x225   : > { %v1541_v6 = vpop.permute.xlu1 %1540 }
 0x229   : > { %v1547_v12 = vpop.permute.xlu1 %1546 }
 0x262   : > { %v1197_v52 = vpop.f32.mrf.mxu0 }
 0x263   : > { %v1207_v53 = vmul.f32 %v3224_v50, %v1197_v52  ;;  %v1675_v50 = vlaneseq }
 0x264   : > { %v3306_v54 = vpop.f32.mrf.mxu0 }
 0x265   : > { %v1214_v55 = vadd.f32 %v3225_v51, %v1207_v53  ;;  %v3958_v51 = vand.u32 127, %v1675_v50  ;;  %v3961_v53 = vld [vmem:[%s3662_s9] sm:$0xff]  ;;  %v3964_v54 = vld [vmem:[%s3662_s9 + $0x8] sm:$0xff] }
 0x266   : > { %v1381_v59 = vpop.f32.mrf.mxu0  ;;  %vm974_vm11 = vcmp.eq.s32.totalorder %v3961_v53, 15  ;;  %vm975_vm12 = vcmp.eq.s32.totalorder %v3964_v54, 15  ;;  %vm972_vm13 = vcmp.eq.s32.totalorder %v3961_v53, 0  ;;  %vm973_vm14 = vcmp.eq.s32.totalorder %v3964_v54, 0 }
 0x267   : > { %v1215_v56 = vmax.f32 %v1214_v55, 0.0  ;;  %vm1677_vm9 = vcmp.lt.s32.totalorder %v3958_v51, 127  ;;  %vm1684_vm10 = vcmp.lt.s32.totalorder %v3958_v51, 1  ;;  %vm1695_vm15 = vcmp.lt.s32.totalorder %v3958_v51, 16 }
 0x268   : > { %v3316_v60 = vpop.f32.mrf.mxu0 }
 0x269   : > { %3310 = vmatmul.mubr.msk.f32.vlgmr.msra.gmra.mxu1 %vm4569_vm6, %v1215_v56 }
 0x26a   : > { %3318 = vmatpush3.msk.msra.mxu1 %vm3906_vm7, %v1307_v47  ;;  %3319 = vmatprep.mubr.msk.f32.mxu1 %vm4573_vm3, %v3641_v36 }
 0x26b   : > { %3327 = vmatprep.subr.mxu1 %v3641_v36 }
 0x26d   : > { %3320 = vmatmul.mubr.msk.f32.vlgmr.msra.gmra.mxu1 %vm1004_vm1, %v1305_v58 }
 0x26e   : > { %3329 = vmatprep.mubr.msk.f32.mxu1 %vm4573_vm3, %v3641_v36  ;;  %vm4575_vm3 = vcmask 588800  }
 0x2da   : > { %v1533_v61 = vpop.f32.mrf.mxu0 }
 0x2dc   : > { %v3326_v62 = vpop.f32.mrf.mxu0 }
 0x329   : > { %v1289_v63 = vpop.f32.mrf.mxu1 }
 0x32a   : > { %v1294_v1 = vsel %vm4568_vm8, %v1289_v63, -inf }
 0x32b   : > { %1295 = vmax.xlane.f32.xlu1 %v1294_v1  ;;  %v3311_v5 = vpop.f32.mrf.mxu1 }
 0x32d   : > { %v1454_v7 = vpop.f32.mrf.mxu1 }
 0x32e   : > { %v1455_v9 = vadd.f32 %v1454_v7, %v1381_v59 }
 0x32f   : > { %v3321_v10 = vpop.f32.mrf.mxu1 }
 0x330   : > { %v1537_v11 = vadd.f32 %v1533_v61, %v1455_v9 }
 0x332   : > { %v1543_v13 = vmul.f32 %v1541_v6, %v1537_v11 }
 0x334   : > { %v1549_v14 = vadd.f32 %v1547_v12, %v1543_v13 }
 0x336   : > { %v1550_v15 = vmax.f32 %v1549_v14, 0.0  ;;  %v4007_v14 = vld [vmem:[%s3667_s13 + $0x8] sm:$0xff] }
 0x337   : > { %vm979_vm6 = vcmp.eq.s32.totalorder %v4007_v14, 15  ;;  %vm4577_vm4 = vcmp.eq.s32.totalorder %v4007_v14, 0 }
 0x338   : > { %3328 = vmatpush3.msk.msra.mxu1 %vm4572_vm2, %v1550_v15  ;;  %v4010_v15 = vld [vmem:[%s3667_s13] sm:$0xff] }
 0x339   : > { %3330 = vmatmul.mubr.msk.f32.vlgmr.msra.gmra.mxu1 %vm4570_vm5, %v996_v16  ;;  %vm4578_vm5 = vcmp.eq.s32.totalorder %v4010_v15, 15  ;;  %vm4576_vm2 = vcmp.eq.s32.totalorder %v4010_v15, 0 }
 0x33a   : > { %1859 = vmatprep.mubr.bf16.mxu1 %v3640_v0 }
 0x3b4   : > { %v1296_v17 = vpop.xlane.xlu1 %1295 }
 0x3b5   : > { %v1297_v18 = vsub.f32 %v1289_v63, %v1296_v17 }
 0x3b7   : > { %v1298_v19 = vmul.f32 1.442695, %v1297_v18 }
 0x3b9   : > { %3581 = vpow2.f32 %v1298_v19 }
 0x3c6   : > { %v3582_v20 = vpop.eup %3581 }
 0x3c7   : > { %v1300_v21 = vsel %vm4568_vm8, %v3582_v20, 0.0  ;;  %vm1702_vm8 = vcmp.lt.s32.totalorder %v3958_v51, 112 }
 0x3c8   : > { %1301 = vadd.xlane.f32.xlu0 %v1300_v21 }
 0x3f9   : > { %v1623_v23 = vpop.f32.mrf.mxu1 }
 0x3fa   : > { %v1627_v24 = vsub.f32 0.0, %v1623_v23 }
 0x3fb   : > { %v3331_v25 = vpop.f32.mrf.mxu1 }
 0x3fc   : > { %v1628_v26 = vmul.f32 1.442695, %v1627_v24 }
 0x3fe   : > { %3583 = vpow2.f32 %v1628_v26 }
 0x40b   : > { %v3584_v27 = vpop.eup %3583 }
 0x40c   : > { %v1630_v28 = vadd.f32 1.0, %v3584_v27 }
 0x40e   : > { %3585 = vrcp.f32 %v1630_v28 }
 0x41b   : > { %v3586_v31 = vpop.eup %3585 }
 0x41c   : > { %1635 = vperm.xlu0 %3410, %v3586_v31  }
 0x420   : > { %3412 = vset.pattern.permute.xlu0 %v3646_v34 }
 0x421   : > { %1641 = vperm.xlu0 %3412, %v3586_v31  }
 0x451   : > { %v1302_v35 = vpop.xlane.xlu0 %1301 }
 0x452   : > { %3587 = vrcp.f32 %v1302_v35 }
 0x45f   : > { %v3588_v37 = vpop.eup %3587 }
 0x460   : > { %v1304_v38 = vmul.f32 %v3588_v37, %v3582_v20 }
 0x462   : > { %1654 = vperm.xlu1 %3413, %v1304_v38   ;;  %1648 = vperm.xlu0 %3412, %v1304_v38  }
 0x466   : > { %3454 = vset.pattern.permute.xlu1 %v3640_v0  ;;  %3465 = vset.pattern.permute.xlu0 %v3640_v0 }
 0x497   : > { %v1636_v39 = vpop.permute.xlu0 %1635 }
 0x498   : > { %v3931_v41 = vmul.f32 %v1636_v39, %v3862_v29  ;;  %v3934_v42 = vmul.f32 %v1636_v39, %v3864_v30 }
 0x49c   : > { %v1642_v40 = vpop.permute.xlu0 %1641 }
 0x49d   : > { %v3937_v43 = vmul.f32 %v1642_v40, %v3866_v32  ;;  %v3940_v44 = vmul.f32 %v1642_v40, %v3868_v33 }
 0x4dd   : > { %v1655_v45 = vpop.permute.xlu1 %1654  ;;  %v3942_v46 = vpop.permute.xlu0 %1648 }
 0x4de   : > { %v1657_v47 = vmul.f32 %v1655_v45, %v3937_v43  ;;  %v1658_v48 = vmul.f32 %v1655_v45, %v3940_v44  ;;  %v1651_v29 = vmul.f32 %v3942_v46, %v3931_v41  ;;  %v1652_v30 = vmul.f32 %v3942_v46, %v3934_v42 }
 0x4e0   : > { %v3950_v32 = vadd.f32 %v1657_v47, %v1651_v29  ;;  %v3952_v49 = vadd.f32 %v1658_v48, %v1652_v30 }
 0x4e2   : > { %v3414_v33 = vpack.i.bf16 %v3952_v49, %v3950_v32 }
 0x4e4   : > { %3415 = vrot.lane.b32.xlu0 %v3414_v33, %s3644_s2 }
 0x4e8   : > { %3420 = vrot.lane.b32.xlu0 %v3414_v33, %s3643_s1 }
 0x556   : > { %v3416_v52 = vpop.permute.xlu0 %3415 }
 0x557   : > { %v3418_v55 = vunpack.i.h.bf16 %v3416_v52  ;;  %v3417_v56 = vunpack.i.l.bf16 %v3416_v52 }
 0x559   : > { %v1678_v61 = vsel %vm1677_vm9, %v3417_v56, %v3418_v55  ;;  %v1679_v62 = vsel %vm1677_vm9, %v3418_v55, %v3417_v56 }
 0x55a   : > { %v3421_v58 = vpop.permute.xlu0 %3420 }
 0x55b   : > { %v3423_v59 = vunpack.i.h.bf16 %v3421_v58  ;;  %v3422_v60 = vunpack.i.l.bf16 %v3421_v58 }
 0x55d   : > { %v1685_v63 = vsel %vm1684_vm10, %v3422_v60, %v3423_v59  ;;  %v1686_v1 = vsel %vm1684_vm10, %v3423_v59, %v3422_v60 }
 0x55e   : > { %v3982_v5 = vsel %vm974_vm11, %v1686_v1, %v1678_v61  ;;  %v3986_v6 = vsel %vm975_vm12, %v1685_v63, %v1679_v62  ;;  %v3990_v7 = vsel %vm972_vm13, %v1678_v61, %v1686_v1  ;;  %v3994_v9 = vsel %vm973_vm14, %v1679_v62, %v1685_v63 }
 0x55f   : > { %v3424_v10 = vpack.i.bf16 %v3986_v6, %v3982_v5  ;;  %v3434_v11 = vpack.i.bf16 %v3994_v9, %v3990_v7 }
 0x561   : > { %3425 = vrot.lane.b32.xlu0 %v3424_v10, %s3647_s7  ;;  %3435 = vrot.lane.b32.xlu1 %v3434_v11, %s3647_s7 }
 0x565   : > { %3430 = vrot.lane.b32.xlu0 %v3424_v10, %s3648_s10  ;;  %3440 = vrot.lane.b32.xlu1 %v3414_v33, %s3647_s7 }
 0x569   : > { %3445 = vrot.lane.b32.xlu0 %v3434_v11, %s3648_s10  ;;  %1662 = vperm.xlu1 %3454, %v1304_v38  }
 0x56d   : > { %3450 = vrot.lane.b32.xlu0 %v3414_v33, %s3648_s10 }
 0x5d3   : > { %v3426_v12 = vpop.permute.xlu0 %3425  ;;  %v3436_v13 = vpop.permute.xlu1 %3435 }
 0x5d4   : > { %v3428_v16 = vunpack.i.h.bf16 %v3426_v12  ;;  %v3427_v17 = vunpack.i.l.bf16 %v3426_v12  ;;  %v3438_v40 = vunpack.i.h.bf16 %v3436_v13  ;;  %v3437_v45 = vunpack.i.l.bf16 %v3436_v13 }
 0x5d5   : > { %v1667_v12 = vmul.f32 %v3942_v46, %v3937_v43 }
 0x5d6   : > { %v1729_v21 = vsel %vm1695_vm15, %v3427_v17, %v3428_v16  ;;  %v1730_v23 = vsel %vm1695_vm15, %v3428_v16, %v3427_v17  ;;  %v1696_v56 = vsel %vm1695_vm15, %v3437_v45, %v3438_v40  ;;  %v1697_v58 = vsel %vm1695_vm15, %v3438_v40, %v3437_v45 }
 0x5d7   : > { %v3431_v18 = vpop.permute.xlu0 %3430  ;;  %v3441_v26 = vpop.permute.xlu1 %3440 }
 0x5d8   : > { %v3433_v19 = vunpack.i.h.bf16 %v3431_v18  ;;  %v3432_v20 = vunpack.i.l.bf16 %v3431_v18  ;;  %v3443_v47 = vunpack.i.h.bf16 %v3441_v26  ;;  %v3442_v48 = vunpack.i.l.bf16 %v3441_v26 }
 0x5d9   : > { %v1668_v18 = vmul.f32 %v3942_v46, %v3940_v44  ;;  %v1746_v26 = vpack.c.bf16 %v3986_v6, %v3952_v49  ;;  %v1745_v44 = vpack.c.bf16 %v3982_v5, %v3950_v32 }
 0x5da   : > { %v1735_v24 = vsel %vm1702_vm8, %v3432_v20, %v3433_v19  ;;  %v1736_v25 = vsel %vm1702_vm8, %v3433_v19, %v3432_v20  ;;  %v1713_v59 = vsel %vm1695_vm15, %v3442_v48, %v3443_v47  ;;  %v1714_v60 = vsel %vm1695_vm15, %v3443_v47, %v3442_v48 }
 0x5db   : > { %v3446_v27 = vpop.permute.xlu0 %3445  ;;  %v1740_v28 = vsel %vm979_vm6, %v1729_v21, %v1736_v25  ;;  %v1739_v31 = vsel %vm4578_vm5, %v1730_v23, %v1735_v24  ;;  %v1737_v49 = vsel %vm4576_vm2, %v1735_v24, %v1730_v23  ;;  %v4090_v24 = vld [vmem:[%s4595_s11] sm:$0xf]  ;;  %s4601_s11 = sld [smem:[#allocation11_spill]] }
 0x5dc   : > { %v3448_v35 = vunpack.i.h.bf16 %v3446_v27  ;;  %v3447_v37 = vunpack.i.l.bf16 %v3446_v27  ;;  %v1750_v38 = vpack.c.bf16 %v1740_v28, %v1740_v28  ;;  %v1749_v39 = vpack.c.bf16 %v1739_v31, %v1739_v31 }
 0x5de   : > { %3238 = vmatprep.subr.msk.bf16.mxu0 %vm1008_vm0, %v1750_v38  ;;  %v1761_v29 = vsel %vm1008_vm0, %v1749_v39, 0  ;;  %v1703_v33 = vsel %vm1702_vm8, %v3447_v37, %v3448_v35  ;;  %v1704_v50 = vsel %vm1702_vm8, %v3448_v35, %v3447_v37 }
 0x5df   : > { %1773 = vmatpush1.bf16.msra.mxu0 %v1761_v29  ;;  %v3451_v30 = vpop.permute.xlu0 %3450  ;;  %v1708_v63 = vsel %vm979_vm6, %v1696_v56, %v1704_v50  ;;  %v1707_v10 = vsel %vm4578_vm5, %v1697_v58, %v1703_v33  ;;  %v1706_v32 = vsel %vm4577_vm4, %v1704_v50, %v1696_v56  ;;  %v989_v56 = vld [vmem:[%s4596_s15] sm:$0xff]  ;;  %s4602_s15 = sld [smem:[#allocation15_spill]] }
 0x5e0   : > { %v3453_v52 = vunpack.i.h.bf16 %v3451_v30  ;;  %v3452_v55 = vunpack.i.l.bf16 %v3451_v30 }
 0x5e2   : > { %v1719_v61 = vsel %vm1702_vm8, %v3452_v55, %v3453_v52  ;;  %v1720_v62 = vsel %vm1702_vm8, %v3453_v52, %v3452_v55 }
 0x5e3   : > { %v1724_v1 = vsel %vm979_vm6, %v1713_v59, %v1720_v62  ;;  %v1723_v11 = vsel %vm4578_vm5, %v1714_v60, %v1719_v61  ;;  %v1722_v6 = vsel %vm4577_vm4, %v1720_v62, %v1713_v59  ;;  %v1721_v28 = vsel %vm4576_vm2, %v1719_v61, %v1714_v60 }
 0x5e4   : > { %v1663_v13 = vpop.permute.xlu1 %1662  ;;  %v1748_v16 = vpack.c.bf16 %v1724_v1, %v1708_v63  ;;  %v1747_v17 = vpack.c.bf16 %v1723_v11, %v1707_v10  ;;  %v1742_v5 = vpack.c.bf16 %v1722_v6, %v1706_v32 }
 0x5e5   : > { %v1665_v19 = vmul.f32 %v1663_v13, %v3931_v41  ;;  %v1666_v20 = vmul.f32 %v1663_v13, %v3934_v42  ;;  %v1738_v41 = vsel %vm4577_vm4, %v1736_v25, %v1729_v21  ;;  %v987_v21 = vld [vmem:[%s3687_s29] sm:$0xff]  ;;  %v1743_v25 = vpack.c.bf16 %v3990_v7, %v1737_v49 }
 0x5e6   : > { %1774 = vmatprep.subr.bf16.mxu0 %v1748_v16  ;;  %v1744_v46 = vpack.c.bf16 %v3994_v9, %v1738_v41  ;;  %v1705_v9 = vsel %vm4576_vm2, %v1703_v33, %v1697_v58  ;;  %v2055_v58 = vld [vmem:[%s4597_s16] sm:$0xff]  ;;  %s4605_s16 = sld [smem:[#allocation14_spill]] }
 0x5e7   : > { %v4063_v27 = vadd.f32 %v1667_v12, %v1665_v19  ;;  %v4065_v43 = vadd.f32 %v1668_v18, %v1666_v20  ;;  %1775 = vmatpush1.bf16.msra.mxu0 %v1747_v17  ;;  %v1741_v23 = vpack.c.bf16 %v1721_v28, %v1705_v9  ;;  %v4138_v20 = vld [vmem:[%s4598_s18] sm:$0xf]  ;;  %s4607_s18 = sld [smem:[#allocation12_spill]] }
 0x5e8   : > { %1776 = vmatprep.subr.bf16.mxu0 %v1746_v26 }
 0x5e9   : > { %v3460_v42 = vpack.i.bf16 %v4065_v43, %v4063_v27 }
 0x5eb   : > { %3461 = vrot.lane.b32.xlu1 %v3460_v42, %s3643_s1  ;;  %3456 = vrot.lane.b32.xlu0 %v3460_v42, %s3644_s2 }
 0x5ec   : > { %1777 = vmatpush1.bf16.msra.mxu0 %v1745_v44 }
 0x5ed   : > { %1778 = vmatprep.subr.bf16.mxu0 %v1744_v46 }
 0x5ef   : > { %1753 = vperm.xlu0 %3465, %v987_v21  }
 0x5f0   : > { %1779 = vmatpush1.bf16.msra.mxu0 %v1743_v25 }
 0x5f1   : > { %1780 = vmatprep.subr.bf16.mxu0 %v1742_v5 }
 0x5f4   : > { %1781 = vmatpush1.bf16.msra.mxu0 %v1741_v23 }
 0x5f7   : > { %3239 = vmatmul.mubr.msk.bf16.vlgmr.msra.gmra.mxu0 %vm4575_vm3, %v4090_v24 }
 0x5f8   : > { %2039 = vmatprep.mubr.bf16.mxu0 %v3640_v0 }
 0x65d   : > { %v3462_v7 = vpop.permute.xlu1 %3461  ;;  %v3457_v31 = vpop.permute.xlu0 %3456 }
 0x65e   : > { %v3464_v35 = vunpack.i.h.bf16 %v3462_v7  ;;  %v3463_v37 = vunpack.i.l.bf16 %v3462_v7  ;;  %v3459_v38 = vunpack.i.h.bf16 %v3457_v31  ;;  %v3458_v39 = vunpack.i.l.bf16 %v3457_v31 }
 0x660   : > { %v1884_v40 = vsel %vm1684_vm10, %v3463_v37, %v3464_v35  ;;  %v1885_v45 = vsel %vm1684_vm10, %v3464_v35, %v3463_v37  ;;  %v1878_v47 = vsel %vm1677_vm9, %v3458_v39, %v3459_v38  ;;  %v1879_v48 = vsel %vm1677_vm9, %v3459_v38, %v3458_v39 }
 0x661   : > { %v4105_v29 = vsel %vm974_vm11, %v1885_v45, %v1878_v47  ;;  %v4109_v30 = vsel %vm975_vm12, %v1884_v40, %v1879_v48  ;;  %v4113_v33 = vsel %vm972_vm13, %v1878_v47, %v1885_v45  ;;  %v4117_v50 = vsel %vm973_vm14, %v1879_v48, %v1884_v40 }
 0x662   : > { %v3466_v52 = vpack.i.bf16 %v4109_v30, %v4105_v29  ;;  %v3476_v55 = vpack.i.bf16 %v4117_v50, %v4113_v33 }
 0x664   : > { %3467 = vrot.lane.b32.xlu1 %v3466_v52, %s3647_s7  ;;  %3477 = vrot.lane.b32.xlu0 %v3476_v55, %s3647_s7 }
 0x668   : > { %3472 = vrot.lane.b32.xlu1 %v3466_v52, %s3648_s10  ;;  %3482 = vrot.lane.b32.xlu0 %v3460_v42, %s3647_s7 }
 0x66a   : > { %v4131_v59 = vpop.permute.xlu0 %1753 }
 0x66c   : > { %3487 = vrot.lane.b32.xlu1 %v3476_v55, %s3648_s10  ;;  %1815 = vperm.xlu0 %3465, %v989_v56  }
 0x670   : > { %3492 = vrot.lane.b32.xlu1 %v3460_v42, %s3648_s10 }
 0x674   : > { %2071 = vperm.xlu1 %3454, %v2055_v58  }
 0x6b7   : > { %v1800_v60 = vpop.f32.mrf.mxu0 }
 0x6b8   : > { %v1801_v61 = vadd.f32 %v1800_v60, %v4131_v59 }
 0x6b9   : > { %v1802_v62 = vpop.f32.mrf.mxu0 }
 0x6ba   : > { %v1807_v63 = vmul.f32 0.01, %v1801_v61  ;;  %v1803_v1 = vadd.f32 %v1802_v62, %v4131_v59 }
 0x6bb   : > { %v1804_v10 = vpop.f32.mrf.mxu0 }
 0x6bc   : > { %v1808_v11 = vmul.f32 0.01, %v1803_v1  ;;  %v1809_v12 = vmax.f32 %v1801_v61, %v1807_v63 }
 0x6bd   : > { %v1805_v13 = vpop.f32.mrf.mxu0 }
 0x6be   : > { %v1810_v16 = vmax.f32 %v1803_v1, %v1808_v11  ;;  %v1811_v17 = vpack.c.bf16 %v1809_v12, %v1809_v12 }
 0x6c0   : > { %v1812_v18 = vpack.c.bf16 %v1810_v16, %v1810_v16  ;;  %v1822_v19 = vsel %vm1008_vm0, %v1811_v17, 0 }
 0x6c2   : > { %3240 = vmatprep.subr.msk.bf16.mxu1 %vm1008_vm0, %v1812_v18 }
 0x6c3   : > { %1842 = vmatpush1.bf16.msra.mxu1 %v1822_v19 }
 0x6c6   : > { %3241 = vmatmul.mubr.msk.bf16.vlgmr.msra.gmra.mxu1 %vm1004_vm1, %v4138_v20 }
 0x6c7   : > { %1986 = vmatprep.mubr.bf16.mxu1 %v3640_v0 }
 0x6d6   : > { %v3468_v26 = vpop.permute.xlu1 %3467  ;;  %v3478_v41 = vpop.permute.xlu0 %3477 }
 0x6d7   : > { %v3470_v42 = vunpack.i.h.bf16 %v3468_v26  ;;  %v3469_v44 = vunpack.i.l.bf16 %v3468_v26  ;;  %v3480_v39 = vunpack.i.h.bf16 %v3478_v41  ;;  %v3479_v40 = vunpack.i.l.bf16 %v3478_v41 }
 0x6d8   : > { %v1943_v26 = vpack.c.bf16 %v4109_v30, %v4065_v43 }
 0x6d9   : > { %v1926_v21 = vsel %vm1695_vm15, %v3469_v44, %v3470_v42  ;;  %v1927_v25 = vsel %vm1695_vm15, %v3470_v42, %v3469_v44  ;;  %v1894_v61 = vsel %vm1695_vm15, %v3479_v40, %v3480_v39  ;;  %v1895_v62 = vsel %vm1695_vm15, %v3480_v39, %v3479_v40  ;;  %v2054_v40 = vld [vmem:[%s4599_s23] sm:$0xf]  ;;  %s4608_s23 = sld [smem:[#allocation13_spill]] }
 0x6da   : > { %v3473_v46 = vpop.permute.xlu1 %3472  ;;  %v3483_v28 = vpop.permute.xlu0 %3482  ;;  %v1942_v42 = vpack.c.bf16 %v4105_v29, %v4063_v27 }
 0x6db   : > { %v3475_v49 = vunpack.i.h.bf16 %v3473_v46  ;;  %v3474_v6 = vunpack.i.l.bf16 %v3473_v46  ;;  %v3485_v45 = vunpack.i.h.bf16 %v3483_v28  ;;  %v3484_v47 = vunpack.i.l.bf16 %v3483_v28 }
 0x6dd   : > { %v1932_v32 = vsel %vm1702_vm8, %v3474_v6, %v3475_v49  ;;  %v1933_v5 = vsel %vm1702_vm8, %v3475_v49, %v3474_v6  ;;  %v1910_v63 = vsel %vm1695_vm15, %v3484_v47, %v3485_v45  ;;  %v1911_v1 = vsel %vm1695_vm15, %v3485_v45, %v3484_v47 }
 0x6de   : > { %v3488_v9 = vpop.permute.xlu1 %3487  ;;  %v1937_v23 = vsel %vm979_vm6, %v1926_v21, %v1933_v5  ;;  %v1936_v7 = vsel %vm4578_vm5, %v1927_v25, %v1932_v32  ;;  %v1935_v41 = vsel %vm4577_vm4, %v1933_v5, %v1926_v21  ;;  %v1934_v46 = vsel %vm4576_vm2, %v1932_v32, %v1927_v25 }
 0x6df   : > { %v3490_v31 = vunpack.i.h.bf16 %v3488_v9  ;;  %v3489_v35 = vunpack.i.l.bf16 %v3488_v9  ;;  %v1947_v37 = vpack.c.bf16 %v1937_v23, %v1937_v23  ;;  %v1946_v38 = vpack.c.bf16 %v1936_v7, %v1936_v7 }
 0x6e0   : > { %v1941_v44 = vpack.c.bf16 %v4117_v50, %v1935_v41  ;;  %v1940_v43 = vpack.c.bf16 %v4113_v33, %v1934_v46 }
 0x6e1   : > { %3242 = vmatprep.subr.msk.bf16.mxu1 %vm1008_vm0, %v1947_v37  ;;  %v1949_v48 = vsel %vm1008_vm0, %v1946_v38, 0  ;;  %v1900_v55 = vsel %vm1702_vm8, %v3489_v35, %v3490_v31  ;;  %v1901_v56 = vsel %vm1702_vm8, %v3490_v31, %v3489_v35 }
 0x6e2   : > { %v3493_v52 = vpop.permute.xlu1 %3492  ;;  %1961 = vmatpush1.bf16.msra.mxu1 %v1949_v48  ;;  %v1905_v12 = vsel %vm979_vm6, %v1894_v61, %v1901_v56  ;;  %v1904_v16 = vsel %vm4578_vm5, %v1895_v62, %v1900_v55  ;;  %v1903_v30 = vsel %vm4577_vm4, %v1901_v56, %v1894_v61  ;;  %v1902_v27 = vsel %vm4576_vm2, %v1900_v55, %v1895_v62 }
 0x6e3   : > { %v3495_v58 = vunpack.i.h.bf16 %v3493_v52  ;;  %v3494_v60 = vunpack.i.l.bf16 %v3493_v52 }
 0x6e5   : > { %v1916_v10 = vsel %vm1702_vm8, %v3494_v60, %v3495_v58  ;;  %v1917_v11 = vsel %vm1702_vm8, %v3495_v58, %v3494_v60 }
 0x6e6   : > { %v1921_v13 = vsel %vm979_vm6, %v1910_v63, %v1917_v11  ;;  %v1920_v17 = vsel %vm4578_vm5, %v1911_v1, %v1916_v10  ;;  %v1919_v49 = vsel %vm4577_vm4, %v1917_v11, %v1910_v63  ;;  %v1918_v21 = vsel %vm4576_vm2, %v1916_v10, %v1911_v1 }
 0x6e7   : > { %v1945_v18 = vpack.c.bf16 %v1921_v13, %v1905_v12  ;;  %v1944_v19 = vpack.c.bf16 %v1920_v17, %v1904_v16  ;;  %v1939_v6 = vpack.c.bf16 %v1919_v49, %v1903_v30  ;;  %v1938_v29 = vpack.c.bf16 %v1918_v21, %v1902_v27  ;;  %v1816_v33 = vpop.permute.xlu0 %1815 }
 0x6e8   : > { %vm4603_vm2 = vcmask 1041408   ;;  %vm4604_vm4 = vcmask 7168   ;;  %vm4606_vm5 = vcmask 15360  }
 0x6e9   : > { %1962 = vmatprep.subr.bf16.mxu1 %v1945_v18 }
 0x6ea   : > { %1963 = vmatpush1.bf16.msra.mxu1 %v1944_v19 }
 0x6eb   : > { %1964 = vmatprep.subr.bf16.mxu1 %v1943_v26 }
 0x6ee   : > { %1965 = vmatpush1.bf16.msra.mxu1 %v1942_v42 }
 0x6ef   : > { %1966 = vmatprep.subr.bf16.mxu1 %v1941_v44  ;;  %v2072_v10 = vpop.permute.xlu1 %2071 }
 0x6f2   : > { %1967 = vmatpush1.bf16.msra.mxu1 %v1940_v43 }
 0x6f3   : > { %1968 = vmatprep.subr.bf16.mxu1 %v1939_v6 }
 0x6f6   : > { %1969 = vmatpush1.bf16.msra.mxu1 %v1938_v29 }
 0x6f9   : > { %3243 = vmatmul.mubr.msk.bf16.vlgmr.msra.gmra.mxu1 %vm4575_vm3, %v4090_v24  ;;  %vm4600_vm3 = vmmov 0  }
 0x6fa   : > { %2115 = vmatprep.mubr.bf16.mxu1 %v3640_v0 }
 0x786   : > { %v1861_v50 = vpop.f32.mrf.mxu1 }
 0x787   : > { %v1862_v25 = vadd.f32 %v1861_v50, %v1816_v33 }
 0x788   : > { %v1863_v32 = vpop.f32.mrf.mxu1 }
 0x789   : > { %v1868_v5 = vadd.f32 %v1862_v25, %v3842_v4  ;;  %v1864_v28 = vadd.f32 %v1863_v32, %v1816_v33 }
 0x78a   : > { %v1865_v9 = vpop.f32.mrf.mxu1 }
 0x78b   : > { %v1870_v23 = vmul.f32 0.01, %v1868_v5  ;;  %v1869_v7 = vadd.f32 %v1864_v28, %v3836_v2 }
 0x78c   : > { %v1866_v31 = vpop.f32.mrf.mxu1 }
 0x78d   : > { %v4204_v35 = vmax.f32 %v1868_v5, %v1870_v23  ;;  %v1871_v37 = vmul.f32 0.01, %v1869_v7 }
 0x78f   : > { %v4206_v38 = vmax.f32 %v1869_v7, %v1871_v37  ;;  %v2067_v24 = vpack.c.bf16 %v4204_v35, %v4204_v35 }
 0x791   : > { %v2068_v39 = vpack.c.bf16 %v4206_v38, %v4206_v38  ;;  %v2078_v4 = vsel %vm1008_vm0, %v2067_v24, 0 }
 0x793   : > { %3246 = vmatprep.subr.msk.bf16.mxu1 %vm1008_vm0, %v2068_v39 }
 0x794   : > { %2098 = vmatpush1.bf16.msra.mxu1 %v2078_v4 }
 0x795   : > { %3332 = vmatprep.subr.mxu1 %v3641_v36 }
 0x797   : > { %3247 = vmatmul.mubr.msk.bf16.vlgmr.msra.gmra.mxu1 %vm1004_vm1, %v2054_v40 }
 0x798   : > { %3334 = vmatprep.mubr.msk.f32.mxu1 %vm4600_vm3, %v3641_v36 }
 0x7b9   : > { %v1988_v2 = vpop.f32.mrf.mxu1 }
 0x7ba   : > { %v1989_v45 = vadd.f32 %v1988_v2, %v4131_v59 }
 0x7bb   : > { %v1990_v47 = vpop.f32.mrf.mxu1 }
 0x7bc   : > { %v1995_v48 = vmul.f32 0.01, %v1989_v45  ;;  %v1991_v52 = vadd.f32 %v1990_v47, %v4131_v59 }
 0x7bd   : > { %v1992_v55 = vpop.f32.mrf.mxu1 }
 0x7be   : > { %v1997_v56 = vmax.f32 %v1989_v45, %v1995_v48  ;;  %v1996_v58 = vmul.f32 0.01, %v1991_v52  ;;  %v2065_v55 = vld [vmem:[%s3802_s4] sm:$0x3] }
 0x7bf   : > { %v1993_v60 = vpop.f32.mrf.mxu1 }
 0x7c0   : > { %v1999_v61 = vpack.c.bf16 %v1997_v56, %v1997_v56  ;;  %v1998_v62 = vmax.f32 %v1991_v52, %v1996_v58  ;;  %v2064_v56 = vld [vmem:[%s3797_s25] sm:$0x3]  ;;  %v3256_v58 = vld [vmem:[%s4602_s15 + $0x2] sm:$0x3] }
 0x7c1   : > { %v2063_v60 = vld [vmem:[%s4605_s16] sm:$0xf]  ;;  %s4622_s16 = sld [smem:[#allocation8_spill]] }
 0x7c2   : > { %v2000_v63 = vpack.c.bf16 %v1998_v62, %v1998_v62  ;;  %v2002_v1 = vsel %vm1008_vm0, %v1999_v61, 0  ;;  %v3261_v61 = vld [vmem:[%s4602_s15 + $0x4] sm:$0x3] }
 0x7c4   : > { %3244 = vmatprep.subr.msk.bf16.mxu0 %vm1008_vm0, %v2000_v63  ;;  %v3252_v63 = vld [vmem:[%s4607_s18] ss:$0 sm:$0xff]  ;;  %s4627_s18 = sld [smem:[#allocation10_spill]] }
 0x7c5   : > { %2022 = vmatpush1.bf16.msra.mxu0 %v2002_v1  ;;  %v3253_v1 = vld [vmem:[%s4608_s23] ss:$0 sm:$0xff] }
 0x7c8   : > { %3245 = vmatmul.mubr.msk.bf16.vlgmr.msra.gmra.mxu0 %vm1004_vm1, %v4138_v20 }
 0x7c9   : > { %2168 = vmatprep.mubr.bf16.mxu0 %v3640_v0 }
 0x7ca   : > { %v2059_v53 = vld [vmem:[%s4627_s18] sm:$0xff] }
 0x857   : > { %v2117_v11 = vpop.f32.mrf.mxu1 }
 0x858   : > { %v2118_v59 = vadd.f32 %v2117_v11, %v2072_v10 }
 0x859   : > { %v2119_v12 = vpop.f32.mrf.mxu1 }
 0x85a   : > { %v2124_v13 = vmul.f32 0.01, %v2118_v59  ;;  %v2120_v16 = vadd.f32 %v2119_v12, %v2072_v10 }
 0x85b   : > { %v2121_v17 = vpop.f32.mrf.mxu1 }
 0x85c   : > { %v2125_v18 = vmul.f32 0.01, %v2120_v16  ;;  %v4226_v26 = vmax.f32 %v2118_v59, %v2124_v13  ;;  %v2368_v17 = vld [vmem:[%s4602_s15] sm:$0x3] }
 0x85d   : > { %v2122_v19 = vpop.f32.mrf.mxu1 }
 0x85e   : > { %v4228_v41 = vmax.f32 %v2120_v16, %v2125_v18 }
 0x860   : > { %v2181_v42 = vadd.f32 %v4228_v41, %v4226_v26 }
 0x862   : > { %2182 = vadd.xlane.f32.xlu0 %v2181_v42 }
 0x888   : > { %v2041_v20 = vpop.f32.mrf.mxu0 }
 0x889   : > { %v2042_v44 = vadd.f32 %v2041_v20, %v1816_v33 }
 0x88a   : > { %v2043_v46 = vpop.f32.mrf.mxu0 }
 0x88b   : > { %v2048_v49 = vadd.f32 %v2042_v44, %v3851_v8  ;;  %v2044_v43 = vadd.f32 %v2043_v46, %v1816_v33 }
 0x88c   : > { %v2045_v30 = vpop.f32.mrf.mxu0 }
 0x88d   : > { %v2050_v6 = vmul.f32 0.01, %v2048_v49  ;;  %v2049_v21 = vadd.f32 %v2044_v43, %v3839_v3 }
 0x88e   : > { %v2046_v27 = vpop.f32.mrf.mxu0 }
 0x88f   : > { %v4234_v29 = vmax.f32 %v2048_v49, %v2050_v6  ;;  %v2051_v50 = vmul.f32 0.01, %v2049_v21 }
 0x891   : > { %v4236_v25 = vmax.f32 %v2049_v21, %v2051_v50  ;;  %v2128_v32 = vpack.c.bf16 %v4234_v29, %v4234_v29 }
 0x893   : > { %v2129_v5 = vpack.c.bf16 %v4236_v25, %v4236_v25  ;;  %v2131_v8 = vsel %vm1008_vm0, %v2128_v32, 0 }
 0x895   : > { %3248 = vmatprep.subr.msk.bf16.mxu0 %vm1008_vm0, %v2129_v5 }
 0x896   : > { %2151 = vmatpush1.bf16.msra.mxu0 %v2131_v8 }
 0x897   : > { %3337 = vmatprep.subr.mxu0 %v3641_v36 }
 0x899   : > { %3249 = vmatmul.mubr.msk.bf16.vlgmr.msra.gmra.mxu0 %vm1004_vm1, %v2054_v40  ;;  %v2060_v40 = vld [vmem:[%s4601_s11] sm:$0x3]  ;;  %s4621_s11 = sld [smem:[#allocation7_spill]] }
 0x89a   : > { %3339 = vmatprep.mubr.msk.f32.mxu0 %vm4600_vm3, %v3641_v36  ;;  %3333 = vmatpush3.msk.msra.mxu1 %vm4603_vm2, %v2060_v40  ;;  %vm4609_vm2 = vmmov %vm4604_vm4 }
 0x89b   : > { %3342 = vmatprep.subr.mxu1 %v3641_v36  ;;  %3338 = vmatpush3.msk.msra.mxu0 %vm1008_vm0, %v2063_v60 }
 0x89c   : > { %3347 = vmatprep.subr.mxu0 %v3641_v36 }
 0x8eb   : > { %v2183_v2 = vpop.xlane.xlu0 %2182 }
 0x8ec   : > { %v2184_v47 = vmul.f32 0.00390625, %v2183_v2 }
 0x959   : > { %v2170_v3 = vpop.f32.mrf.mxu0 }
 0x95a   : > { %v2171_v33 = vadd.f32 %v2170_v3, %v2072_v10 }
 0x95b   : > { %v2172_v28 = vpop.f32.mrf.mxu0 }
 0x95c   : > { %v2177_v9 = vmul.f32 0.01, %v2171_v33  ;;  %v2173_v23 = vadd.f32 %v2172_v28, %v2072_v10 }
 0x95d   : > { %v2174_v7 = vpop.f32.mrf.mxu0 }
 0x95e   : > { %v2178_v31 = vmul.f32 0.01, %v2173_v23  ;;  %v4248_v24 = vmax.f32 %v2171_v33, %v2177_v9 }
 0x95f   : > { %v2175_v37 = vpop.f32.mrf.mxu0 }
 0x960   : > { %v4250_v39 = vmax.f32 %v2173_v23, %v2178_v31 }
 0x962   : > { %v2185_v4 = vadd.f32 %v4250_v39, %v4248_v24 }
 0x964   : > { %2186 = vadd.xlane.f32.xlu1 %v2185_v4 }
 0x9ed   : > { %v2187_v45 = vpop.xlane.xlu1 %2186 }
 0x9ee   : > { %v2188_v48 = vmul.f32 0.00390625, %v2187_v45 }
 0x9f0   : > { %v2189_v52 = vsel %vm4604_vm4, %v2184_v47, %v2188_v48  ;;  %vm4610_vm4 = vcmask 31744  }
 0x9f1   : > { %2523 = vrot.lane.b32.xlu1 %v2189_v52, %s3644_s2  ;;  %2369 = vrot.lane.b32.xlu0 %v2189_v52, %s3643_s1 }
 0x9f2   : > { %3335 = vmatmul.mubr.msk.f32.vlgmr.msra.gmra.mxu1 %vm4606_vm5, %v2189_v52  ;;  %vm4611_vm5 = vcmask 23552  }
 0x9f3   : > { %3343 = vmatpush3.msra.mxu1 %v2189_v52  ;;  %3344 = vmatprep.mubr.msk.f32.mxu1 %vm4600_vm3, %v3641_v36 }
 0x9f4   : > { %3352 = vmatprep.subr.mxu1 %v3641_v36 }
 0x9f5   : > { %2609 = vperm.xlu1 %3454, %v2065_v55   ;;  %2603 = vperm.xlu0 %3465, %v2064_v56  }
 0x9f6   : > { %3345 = vmatmul.mubr.msk.f32.vlgmr.msra.gmra.mxu1 %vm1004_vm1, %v3256_v58 }
 0x9f7   : > { %3354 = vmatprep.mubr.msk.f32.mxu1 %vm4600_vm3, %v3641_v36 }
 0x9f9   : > { %3496 = vset.pattern.permute.xlu1 %v3646_v34 }
 0xa63   : > { %v2524_v62 = vpop.permute.xlu1 %2523  ;;  %v2370_v16 = vpop.permute.xlu0 %2369 }
 0xa64   : > { %3353 = vmatpush3.msk.msra.mxu1 %vm4609_vm2, %v2524_v62  ;;  %vm4614_vm2 = vmmov %vm4611_vm5 }
 0xa65   : > { %3355 = vmatmul.mubr.msk.f32.vlgmr.msra.gmra.mxu1 %vm1004_vm1, %v3261_v61 }
 0xa66   : > { %2854 = vmatprep.mubr.bf16.mxu1 %v3640_v0 }
 0xa70   : > { %v2604_v21 = vpop.permute.xlu0 %2603  ;;  %v2610_v50 = vpop.permute.xlu1 %2609 }
 0xab2   : > { %v2262_v10 = vpop.f32.mrf.mxu1 }
 0xab3   : > { %v2272_v11 = vmul.f32 %v3252_v63, %v2262_v10 }
 0xab4   : > { %v3336_v59 = vpop.f32.mrf.mxu1 }
 0xab5   : > { %v2279_v12 = vadd.f32 %v3253_v1, %v2272_v11 }
 0xab6   : > { %v2444_v18 = vpop.f32.mrf.mxu1 }
 0xab7   : > { %v2280_v13 = vmax.f32 %v2279_v12, 0.0 }
 0xab8   : > { %v3346_v19 = vpop.f32.mrf.mxu1 }
 0xab9   : > { %3340 = vmatmul.mubr.msk.f32.vlgmr.msra.gmra.mxu0 %vm4610_vm4, %v2280_v13  ;;  %vm4615_vm4 = vcmp.eq.s32.totalorder %v4010_v15, 15 }
 0xaba   : > { %3348 = vmatpush3.msk.msra.mxu0 %vm3906_vm7, %v2370_v16  ;;  %3349 = vmatprep.mubr.msk.f32.mxu0 %vm4600_vm3, %v3641_v36  ;;  %vm4613_vm7 = vcmask 15360  }
 0xabb   : > { %3357 = vmatprep.subr.mxu0 %v3641_v36 }
 0xabd   : > { %3350 = vmatmul.mubr.msk.f32.vlgmr.msra.gmra.mxu0 %vm1004_vm1, %v2368_v17 }
 0xabe   : > { %3359 = vmatprep.mubr.msk.f32.mxu0 %vm4600_vm3, %v3641_v36  ;;  %v2066_v36 = vld [vmem:[%s3807_s3] sm:$0xff]  ;;  %vm4612_vm3 = vcmask 1041408  }
 0xb25   : > { %v2596_v42 = vpop.f32.mrf.mxu1 }
 0xb27   : > { %v3356_v20 = vpop.f32.mrf.mxu1 }
 0xb79   : > { %v2353_v44 = vpop.f32.mrf.mxu0 }
 0xb7a   : > { %v2357_v57 = vsel %vm4611_vm5, %v2353_v44, -inf  ;;  %vm4616_vm5 = vmmov %vm4615_vm4 }
 0xb7b   : > { %2358 = vmax.xlane.f32.xlu0 %v2357_v57  ;;  %v3341_v46 = vpop.f32.mrf.mxu0 }
 0xb7d   : > { %v2517_v49 = vpop.f32.mrf.mxu0 }
 0xb7e   : > { %v2518_v43 = vadd.f32 %v2517_v49, %v2444_v18 }
 0xb7f   : > { %v3351_v30 = vpop.f32.mrf.mxu0 }
 0xb80   : > { %v2600_v6 = vadd.f32 %v2596_v42, %v2518_v43 }
 0xb82   : > { %v2606_v27 = vmul.f32 %v2604_v21, %v2600_v6 }
 0xb84   : > { %v2612_v32 = vadd.f32 %v2610_v50, %v2606_v27 }
 0xb86   : > { %v2613_v5 = vmax.f32 %v2612_v32, 0.0 }
 0xb88   : > { %3358 = vmatpush3.msk.msra.mxu0 %vm4612_vm3, %v2613_v5  ;;  %vm4617_vm3 = vmmov %vm4615_vm4 }
 0xb89   : > { %3360 = vmatmul.mubr.msk.f32.vlgmr.msra.gmra.mxu0 %vm4613_vm7, %v2066_v36  ;;  %vm4618_vm7 = vcmp.eq.s32.totalorder %v4007_v14, 0 }
 0xb8a   : > { %2915 = vmatprep.mubr.bf16.mxu0 %v3640_v0 }
 0xc04   : > { %v2359_v8 = vpop.xlane.xlu0 %2358 }
 0xc05   : > { %v2360_v3 = vsub.f32 %v2353_v44, %v2359_v8 }
 0xc07   : > { %v2361_v33 = vmul.f32 1.442695, %v2360_v3 }
 0xc09   : > { %3589 = vpow2.f32 %v2361_v33 }
 0xc16   : > { %v3590_v28 = vpop.eup %3589 }
 0xc17   : > { %v2363_v9 = vsel %vm4614_vm2, %v3590_v28, 0.0  ;;  %vm4619_vm2 = vcmp.eq.s32.totalorder %v4010_v15, 0 }
 0xc18   : > { %2364 = vadd.xlane.f32.xlu1 %v2363_v9 }
 0xc49   : > { %v2686_v23 = vpop.f32.mrf.mxu0 }
 0xc4a   : > { %v2690_v7 = vsub.f32 0.0, %v2686_v23 }
 0xc4b   : > { %v3361_v31 = vpop.f32.mrf.mxu0 }
 0xc4c   : > { %v2691_v37 = vmul.f32 1.442695, %v2690_v7 }
 0xc4e   : > { %3591 = vpow2.f32 %v2691_v37 }
 0xc5b   : > { %v3592_v4 = vpop.eup %3591 }
 0xc5c   : > { %v2693_v40 = vadd.f32 1.0, %v3592_v4 }
 0xc5e   : > { %3593 = vrcp.f32 %v2693_v40 }
 0xc6b   : > { %v3594_v2 = vpop.eup %3593 }
 0xc6c   : > { %2704 = vperm.xlu1 %3496, %v3594_v2   ;;  %2698 = vperm.xlu0 %3465, %v3594_v2  }
 0xc70   : > { %3498 = vset.pattern.permute.xlu1 %v3645_v22  ;;  %3497 = vset.pattern.permute.xlu0 %v3646_v34 }
 0xca1   : > { %v2365_v45 = vpop.xlane.xlu1 %2364 }
 0xca2   : > { %3595 = vrcp.f32 %v2365_v45 }
 0xcaf   : > { %v3596_v47 = vpop.eup %3595 }
 0xcb0   : > { %v2367_v48 = vmul.f32 %v3596_v47, %v3590_v28 }
 0xcb2   : > { %2717 = vperm.xlu1 %3498, %v2367_v48   ;;  %2711 = vperm.xlu0 %3497, %v2367_v48  }
 0xcb6   : > { %3539 = vset.pattern.permute.xlu1 %v3640_v0  ;;  %3550 = vset.pattern.permute.xlu0 %v3640_v0 }
 0xce7   : > { %v2705_v52 = vpop.permute.xlu1 %2704  ;;  %v2699_v55 = vpop.permute.xlu0 %2698 }
 0xce8   : > { %v4301_v56 = vmul.f32 %v2705_v52, %v4248_v24  ;;  %v4304_v58 = vmul.f32 %v2705_v52, %v4250_v39  ;;  %v4307_v22 = vmul.f32 %v2699_v55, %v4226_v26  ;;  %v4310_v34 = vmul.f32 %v2699_v55, %v4228_v41 }
 0xd2d   : > { %v2718_v60 = vpop.permute.xlu1 %2717  ;;  %v4312_v61 = vpop.permute.xlu0 %2711 }
 0xd2e   : > { %v2720_v62 = vmul.f32 %v2718_v60, %v4301_v56  ;;  %v2721_v63 = vmul.f32 %v2718_v60, %v4304_v58  ;;  %v2714_v24 = vmul.f32 %v4312_v61, %v4307_v22  ;;  %v2715_v39 = vmul.f32 %v4312_v61, %v4310_v34 }
 0xd30   : > { %v4320_v1 = vadd.f32 %v2720_v62, %v2714_v24  ;;  %v4322_v26 = vadd.f32 %v2721_v63, %v2715_v39 }
 0xd32   : > { %v3504_v41 = vpack.i.bf16 %v4322_v26, %v4320_v1 }
 0xd34   : > { %3505 = vrot.lane.b32.xlu0 %v3504_v41, %s3643_s1  ;;  %3500 = vrot.lane.b32.xlu1 %v3504_v41, %s3644_s2 }
 0xda6   : > { %v3506_v10 = vpop.permute.xlu0 %3505  ;;  %v3501_v11 = vpop.permute.xlu1 %3500 }
 0xda7   : > { %v3508_v59 = vunpack.i.h.bf16 %v3506_v10  ;;  %v3507_v12 = vunpack.i.l.bf16 %v3506_v10  ;;  %v3503_v13 = vunpack.i.h.bf16 %v3501_v11  ;;  %v3502_v16 = vunpack.i.l.bf16 %v3501_v11 }
 0xda9   : > { %v2744_v17 = vsel %vm1684_vm10, %v3507_v12, %v3508_v59  ;;  %v2745_v18 = vsel %vm1684_vm10, %v3508_v59, %v3507_v12  ;;  %v2738_v19 = vsel %vm1677_vm9, %v3502_v16, %v3503_v13  ;;  %v2739_v42 = vsel %vm1677_vm9, %v3503_v13, %v3502_v16 }
 0xdaa   : > { %v4338_v20 = vsel %vm974_vm11, %v2745_v18, %v2738_v19  ;;  %v2749_v44 = vsel %vm975_vm12, %v2744_v17, %v2739_v42  ;;  %v4345_v46 = vsel %vm972_vm13, %v2738_v19, %v2745_v18  ;;  %v4349_v49 = vsel %vm973_vm14, %v2739_v42, %v2744_v17 }
 0xdab   : > { %v3514_v57 = vpack.i.bf16 %v2749_v44, %v4338_v20  ;;  %v3529_v43 = vpack.i.bf16 %v4349_v49, %v4345_v46 }
 0xdad   : > { %3515 = vrot.lane.b32.xlu0 %v3514_v57, %s3648_s10  ;;  %3510 = vrot.lane.b32.xlu1 %v3514_v57, %s3647_s7  ;;  %v2803_v57 = vpack.c.bf16 %v2749_v44, %v4322_v26  ;;  %v2730_v26 = vmul.f32 %v4312_v61, %v4301_v56  ;;  %v2731_v44 = vmul.f32 %v4312_v61, %v4304_v58 }
 0xdb1   : > { %3530 = vrot.lane.b32.xlu0 %v3529_v43, %s3648_s10  ;;  %3520 = vrot.lane.b32.xlu1 %v3529_v43, %s3647_s7 }
 0xdb5   : > { %3535 = vrot.lane.b32.xlu0 %v3504_v41, %s3648_s10  ;;  %3525 = vrot.lane.b32.xlu1 %v3504_v41, %s3647_s7 }
 0xdb9   : > { %2725 = vperm.xlu1 %3539, %v2367_v48  }
 0xe1f   : > { %v3516_v30 = vpop.permute.xlu0 %3515  ;;  %v3511_v6 = vpop.permute.xlu1 %3510 }
 0xe20   : > { %v3518_v21 = vunpack.i.h.bf16 %v3516_v30  ;;  %v3517_v27 = vunpack.i.l.bf16 %v3516_v30  ;;  %v3513_v50 = vunpack.i.h.bf16 %v3511_v6  ;;  %v3512_v32 = vunpack.i.l.bf16 %v3511_v6 }
 0xe21   : > { %v2802_v30 = vpack.c.bf16 %v4338_v20, %v4320_v1 }
 0xe22   : > { %v2792_v5 = vsel %vm1702_vm8, %v3517_v27, %v3518_v21  ;;  %v2793_v36 = vsel %vm1702_vm8, %v3518_v21, %v3517_v27  ;;  %v2786_v8 = vsel %vm1695_vm15, %v3512_v32, %v3513_v50  ;;  %v2787_v3 = vsel %vm1695_vm15, %v3513_v50, %v3512_v32 }
 0xe23   : > { %v3531_v33 = vpop.permute.xlu0 %3530  ;;  %v3521_v28 = vpop.permute.xlu1 %3520  ;;  %v2797_v9 = vsel %vm979_vm6, %v2786_v8, %v2793_v36  ;;  %v2796_v23 = vsel %vm4615_vm4, %v2787_v3, %v2792_v5  ;;  %v2795_v43 = vsel %vm4618_vm7, %v2793_v36, %v2786_v8  ;;  %v2794_v21 = vsel %vm4619_vm2, %v2792_v5, %v2787_v3  ;;  %vm4620_vm4 = vmmov %vm4618_vm7  ;;  %v2057_v8 = vld [vmem:[%s4622_s16] sm:$0xff] }
 0xe24   : > { %v3533_v7 = vunpack.i.h.bf16 %v3531_v33  ;;  %v3532_v31 = vunpack.i.l.bf16 %v3531_v33  ;;  %v3523_v37 = vunpack.i.h.bf16 %v3521_v28  ;;  %v3522_v4 = vunpack.i.l.bf16 %v3521_v28  ;;  %vm4625_vm7 = vmmov %vm4619_vm2 }
 0xe25   : > { %v2807_v40 = vpack.c.bf16 %v2797_v9, %v2797_v9  ;;  %v2806_v2 = vpack.c.bf16 %v2796_v23, %v2796_v23  ;;  %v2801_v6 = vpack.c.bf16 %v4349_v49, %v2795_v43  ;;  %v2800_v20 = vpack.c.bf16 %v4345_v46, %v2794_v21  ;;  %v4429_v46 = vld [vmem:[%s4621_s11] sm:$0xf] }
 0xe26   : > { %v2760_v45 = vsel %vm1702_vm8, %v3532_v31, %v3533_v7  ;;  %v2761_v47 = vsel %vm1702_vm8, %v3533_v7, %v3532_v31  ;;  %v2754_v48 = vsel %vm1695_vm15, %v3522_v4, %v3523_v37  ;;  %v2755_v52 = vsel %vm1695_vm15, %v3523_v37, %v3522_v4 }
 0xe27   : > { %3266 = vmatprep.subr.msk.bf16.mxu1 %vm1008_vm0, %v2807_v40  ;;  %v2817_v55 = vsel %vm1008_vm0, %v2806_v2, 0  ;;  %v3536_v60 = vpop.permute.xlu0 %3535  ;;  %v3526_v62 = vpop.permute.xlu1 %3525  ;;  %v2765_v13 = vsel %vm979_vm6, %v2754_v48, %v2761_v47  ;;  %v2764_v17 = vsel %vm4616_vm5, %v2755_v52, %v2760_v45  ;;  %vm4623_vm5 = vmmov %vm4620_vm4 }
 0xe28   : > { %2829 = vmatpush1.bf16.msra.mxu1 %v2817_v55  ;;  %v3538_v63 = vunpack.i.h.bf16 %v3536_v60  ;;  %v3537_v24 = vunpack.i.l.bf16 %v3536_v60  ;;  %v3528_v39 = vunpack.i.h.bf16 %v3526_v62  ;;  %v3527_v41 = vunpack.i.l.bf16 %v3526_v62 }
 0xe29   : > { %v2763_v49 = vsel %vm4623_vm5, %v2761_v47, %v2754_v48 }
 0xe2a   : > { %v2776_v10 = vsel %vm1702_vm8, %v3537_v24, %v3538_v63  ;;  %v2777_v11 = vsel %vm1702_vm8, %v3538_v63, %v3537_v24  ;;  %v2770_v59 = vsel %vm1695_vm15, %v3527_v41, %v3528_v39  ;;  %v2771_v12 = vsel %vm1695_vm15, %v3528_v39, %v3527_v41 }
 0xe2b   : > { %v2781_v16 = vsel %vm979_vm6, %v2770_v59, %v2777_v11  ;;  %v2780_v18 = vsel %vm4617_vm3, %v2771_v12, %v2776_v10  ;;  %v2779_v27 = vsel %vm4620_vm4, %v2777_v11, %v2770_v59  ;;  %vm4624_vm3 = vmmov %vm4619_vm2  ;;  %vm4626_vm2 = vcmask 588800  }
 0xe2c   : > { %v2805_v19 = vpack.c.bf16 %v2781_v16, %v2765_v13  ;;  %v2804_v42 = vpack.c.bf16 %v2780_v18, %v2764_v17  ;;  %v2799_v5 = vpack.c.bf16 %v2779_v27, %v2763_v49  ;;  %v2778_v58 = vsel %vm4624_vm3, %v2776_v10, %v2771_v12 }
 0xe2e   : > { %2830 = vmatprep.subr.bf16.mxu1 %v2805_v19 }
 0xe2f   : > { %2831 = vmatpush1.bf16.msra.mxu1 %v2804_v42 }
 0xe30   : > { %2832 = vmatprep.subr.bf16.mxu1 %v2803_v57 }
 0xe33   : > { %2833 = vmatpush1.bf16.msra.mxu1 %v2802_v30 }
 0xe34   : > { %v2726_v50 = vpop.permute.xlu1 %2725  ;;  %2834 = vmatprep.subr.bf16.mxu1 %v2801_v6 }
 0xe35   : > { %v2728_v32 = vmul.f32 %v2726_v50, %v4307_v22  ;;  %v2729_v1 = vmul.f32 %v2726_v50, %v4310_v34  ;;  %v2762_v34 = vsel %vm4625_vm7, %v2760_v45, %v2755_v52 }
 0xe36   : > { %v2798_v61 = vpack.c.bf16 %v2778_v58, %v2762_v34 }
 0xe37   : > { %v4416_v36 = vadd.f32 %v2730_v26, %v2728_v32  ;;  %v4418_v56 = vadd.f32 %v2731_v44, %v2729_v1  ;;  %2835 = vmatpush1.bf16.msra.mxu1 %v2800_v20 }
 0xe38   : > { %2836 = vmatprep.subr.bf16.mxu1 %v2799_v5 }
 0xe39   : > { %v3545_v22 = vpack.i.bf16 %v4418_v56, %v4416_v36 }
 0xe3b   : > { %3546 = vrot.lane.b32.xlu1 %v3545_v22, %s3643_s1  ;;  %3541 = vrot.lane.b32.xlu0 %v3545_v22, %s3644_s2  ;;  %s4628_s1 = sld [smem:[#allocation9_spill]]  ;;  %s4545_s2 = scalar_lea.vmem %s3812_s8, %s3276_s0 }
 0xe3c   : > { %2837 = vmatpush1.bf16.msra.mxu1 %v2798_v61 }
 0xe3f   : > { %3267 = vmatmul.mubr.msk.bf16.vlgmr.msra.gmra.mxu1 %vm4626_vm2, %v4429_v46  ;;  %2810 = vperm.xlu0 %3550, %v2057_v8  }
 0xe40   : > { %3095 = vmatprep.mubr.bf16.mxu1 %v3640_v0 }
 0xe41   : > { %v4477_v18 = vld [vmem:[%s4628_s1] sm:$0xf] }
 0xead   : > { %v3547_v3 = vpop.permute.xlu1 %3546  ;;  %v3542_v33 = vpop.permute.xlu0 %3541 }
 0xeae   : > { %v3549_v28 = vunpack.i.h.bf16 %v3547_v3  ;;  %v3548_v9 = vunpack.i.l.bf16 %v3547_v3  ;;  %v3544_v23 = vunpack.i.h.bf16 %v3542_v33  ;;  %v3543_v7 = vunpack.i.l.bf16 %v3542_v33 }
 0xeb0   : > { %v2940_v31 = vsel %vm1684_vm10, %v3548_v9, %v3549_v28  ;;  %v2941_v37 = vsel %vm1684_vm10, %v3549_v28, %v3548_v9  ;;  %v2934_v4 = vsel %vm1677_vm9, %v3543_v7, %v3544_v23  ;;  %v2935_v40 = vsel %vm1677_vm9, %v3544_v23, %v3543_v7 }
 0xeb1   : > { %v4445_v2 = vsel %vm974_vm11, %v2941_v37, %v2934_v4  ;;  %v4449_v45 = vsel %vm975_vm12, %v2940_v31, %v2935_v40  ;;  %v4453_v47 = vsel %vm972_vm13, %v2934_v4, %v2941_v37  ;;  %v4457_v48 = vsel %vm973_vm14, %v2935_v40, %v2940_v31  ;;  %vm4634_vm12 = vmmov %vm4620_vm4 }
 0xeb2   : > { %v3551_v52 = vpack.i.bf16 %v4449_v45, %v4445_v2  ;;  %v3561_v55 = vpack.i.bf16 %v4457_v48, %v4453_v47  ;;  %vm4629_vm9 = vcmp.eq.s32.totalorder %v4010_v15, 15  ;;  %vm4635_vm13 = vmmov %vm4620_vm4 }
 0xeb3   : > { %vm4630_vm10 = vmmov %vm4629_vm9 }
 0xeb4   : > { %3552 = vrot.lane.b32.xlu1 %v3551_v52, %s3647_s7  ;;  %3562 = vrot.lane.b32.xlu0 %v3561_v55, %s3647_s7  ;;  %vm4631_vm11 = vmmov %vm4629_vm9 }
 0xeb5   : > { %vm4636_vm14 = vmmov %vm4624_vm3 }
 0xeb8   : > { %3557 = vrot.lane.b32.xlu1 %v3551_v52, %s3648_s10  ;;  %3567 = vrot.lane.b32.xlu0 %v3545_v22, %s3647_s7 }
 0xeba   : > { %v4470_v54 = vpop.permute.xlu0 %2810 }
 0xebc   : > { %3572 = vrot.lane.b32.xlu1 %v3561_v55, %s3648_s10  ;;  %2871 = vperm.xlu0 %3550, %v2059_v53  }
 0xec0   : > { %3577 = vrot.lane.b32.xlu1 %v3545_v22, %s3648_s10 }
 0xeff   : > { %v2856_v60 = vpop.f32.mrf.mxu1 }
 0xf00   : > { %v2857_v62 = vadd.f32 %v2856_v60, %v4470_v54 }
 0xf01   : > { %v2858_v63 = vpop.f32.mrf.mxu1 }
 0xf02   : > { %v2863_v24 = vmul.f32 0.01, %v2857_v62  ;;  %v2859_v39 = vadd.f32 %v2858_v63, %v4470_v54 }
 0xf03   : > { %v2860_v41 = vpop.f32.mrf.mxu1 }
 0xf04   : > { %v2864_v10 = vmul.f32 0.01, %v2859_v39  ;;  %v2865_v11 = vmax.f32 %v2857_v62, %v2863_v24 }
 0xf05   : > { %v2861_v59 = vpop.f32.mrf.mxu1 }
 0xf06   : > { %v2866_v12 = vmax.f32 %v2859_v39, %v2864_v10  ;;  %v2867_v13 = vpack.c.bf16 %v2865_v11, %v2865_v11  ;;  %v2999_v10 = vpack.c.bf16 %v4449_v45, %v4418_v56  ;;  %v2998_v11 = vpack.c.bf16 %v4445_v2, %v4416_v36 }
 0xf08   : > { %v2868_v16 = vpack.c.bf16 %v2866_v12, %v2866_v12  ;;  %v2878_v17 = vsel %vm1008_vm0, %v2867_v13, 0 }
 0xf0a   : > { %3268 = vmatprep.subr.msk.bf16.mxu0 %vm1008_vm0, %v2868_v16 }
 0xf0b   : > { %2898 = vmatpush1.bf16.msra.mxu0 %v2878_v17 }
 0xf0e   : > { %3269 = vmatmul.mubr.msk.bf16.vlgmr.msra.gmra.mxu0 %vm1004_vm1, %v4477_v18 }
 0xf0f   : > { %3042 = vmatprep.mubr.bf16.mxu0 %v3640_v0 }
 0xf26   : > { %v3553_v19 = vpop.permute.xlu1 %3552  ;;  %v3563_v42 = vpop.permute.xlu0 %3562 }
 0xf27   : > { %v3555_v57 = vunpack.i.h.bf16 %v3553_v19  ;;  %v3554_v43 = vunpack.i.l.bf16 %v3553_v19  ;;  %v3565_v34 = vunpack.i.h.bf16 %v3563_v42  ;;  %v3564_v61 = vunpack.i.l.bf16 %v3563_v42 }
 0xf29   : > { %v2982_v27 = vsel %vm1695_vm15, %v3554_v43, %v3555_v57  ;;  %v2983_v26 = vsel %vm1695_vm15, %v3555_v57, %v3554_v43  ;;  %v2950_v37 = vsel %vm1695_vm15, %v3564_v61, %v3565_v34  ;;  %v2951_v4 = vsel %vm1695_vm15, %v3565_v34, %v3564_v61 }
 0xf2a   : > { %v3558_v30 = vpop.permute.xlu1 %3557  ;;  %v3568_v0 = vpop.permute.xlu0 %3567 }
 0xf2b   : > { %v3560_v6 = vunpack.i.h.bf16 %v3558_v30  ;;  %v3559_v21 = vunpack.i.l.bf16 %v3558_v30  ;;  %v3570_v8 = vunpack.i.h.bf16 %v3568_v0  ;;  %v3569_v3 = vunpack.i.l.bf16 %v3568_v0 }
 0xf2d   : > { %v2988_v44 = vsel %vm1702_vm8, %v3559_v21, %v3560_v6  ;;  %v2989_v50 = vsel %vm1702_vm8, %v3560_v6, %v3559_v21  ;;  %v2966_v40 = vsel %vm1695_vm15, %v3569_v3, %v3570_v8  ;;  %v2967_v52 = vsel %vm1695_vm15, %v3570_v8, %v3569_v3  ;;  %vm4637_vm15 = vmmov %vm4624_vm3 }
 0xf2e   : > { %v3573_v32 = vpop.permute.xlu1 %3572  ;;  %v2993_v1 = vsel %vm979_vm6, %v2982_v27, %v2989_v50  ;;  %v2992_v20 = vsel %vm4629_vm9, %v2983_v26, %v2988_v44 }
 0xf2f   : > { %v3575_v49 = vunpack.i.h.bf16 %v3573_v32  ;;  %v3574_v5 = vunpack.i.l.bf16 %v3573_v32  ;;  %v3003_v58 = vpack.c.bf16 %v2993_v1, %v2993_v1  ;;  %v3002_v22 = vpack.c.bf16 %v2992_v20, %v2992_v20 }
 0xf31   : > { %3270 = vmatprep.subr.msk.bf16.mxu0 %vm1008_vm0, %v3003_v58  ;;  %v3005_v33 = vsel %vm1008_vm0, %v3002_v22, 0  ;;  %v2956_v9 = vsel %vm1702_vm8, %v3574_v5, %v3575_v49  ;;  %v2957_v23 = vsel %vm1702_vm8, %v3575_v49, %v3574_v5 }
 0xf32   : > { %v3578_v28 = vpop.permute.xlu1 %3577  ;;  %3017 = vmatpush1.bf16.msra.mxu0 %v3005_v33  ;;  %v2961_v62 = vsel %vm979_vm6, %v2950_v37, %v2957_v23  ;;  %v2960_v24 = vsel %vm4631_vm11, %v2951_v4, %v2956_v9  ;;  %v2959_v45 = vsel %vm4635_vm13, %v2957_v23, %v2950_v37  ;;  %v2958_v36 = vsel %vm4637_vm15, %v2956_v9, %v2951_v4 }
 0xf33   : > { %v3580_v7 = vunpack.i.h.bf16 %v3578_v28  ;;  %v3579_v31 = vunpack.i.l.bf16 %v3578_v28 }
 0xf35   : > { %v2972_v55 = vsel %vm1702_vm8, %v3579_v31, %v3580_v7  ;;  %v2973_v53 = vsel %vm1702_vm8, %v3580_v7, %v3579_v31  ;;  %vm4632_vm8 = vmmov %vm4620_vm4 }
 0xf36   : > { %v2976_v60 = vsel %vm4630_vm10, %v2967_v52, %v2972_v55  ;;  %v2977_v63 = vsel %vm979_vm6, %v2966_v40, %v2973_v53  ;;  %v2991_v51 = vsel %vm4632_vm8, %v2989_v50, %v2982_v27  ;;  %vm4633_vm6 = vmmov %vm4624_vm3  ;;  %v2975_v13 = vsel %vm4634_vm12, %v2973_v53, %v2966_v40  ;;  %v3598_v50 = vld [vmem:[%s3833_s28 + $0x8] sm:$0xff] }
 0xf37   : > { %v3001_v39 = vpack.c.bf16 %v2977_v63, %v2961_v62  ;;  %v3000_v41 = vpack.c.bf16 %v2976_v60, %v2960_v24  ;;  %v2997_v59 = vpack.c.bf16 %v4457_v48, %v2991_v51  ;;  %v2990_v12 = vsel %vm4633_vm6, %v2988_v44, %v2983_v26  ;;  %vm4638_vm4 = vmmov %vm4626_vm2 }
 0xf38   : > { %v2996_v56 = vpack.c.bf16 %v4453_v47, %v2990_v12  ;;  %v2974_v16 = vsel %vm4636_vm14, %v2972_v55, %v2967_v52  ;;  %v2995_v17 = vpack.c.bf16 %v2975_v13, %v2959_v45  ;;  %v2872_v47 = vpop.permute.xlu0 %2871  ;;  %v3599_v55 = vld [vmem:[%s3833_s28 + $0x10] sm:$0xff] }
 0xf39   : > { %3018 = vmatprep.subr.bf16.mxu0 %v3001_v39  ;;  %v2994_v2 = vpack.c.bf16 %v2974_v16, %v2958_v36 }
 0xf3a   : > { %3019 = vmatpush1.bf16.msra.mxu0 %v3000_v41 }
 0xf3b   : > { %3020 = vmatprep.subr.bf16.mxu0 %v2999_v10 }
 0xf3e   : > { %3021 = vmatpush1.bf16.msra.mxu0 %v2998_v11 }
 0xf3f   : > { %3022 = vmatprep.subr.bf16.mxu0 %v2997_v59 }
 0xf42   : > { %3023 = vmatpush1.bf16.msra.mxu0 %v2996_v56 }
 0xf43   : > { %3024 = vmatprep.subr.bf16.mxu0 %v2995_v17 }
 0xf46   : > { %3025 = vmatpush1.bf16.msra.mxu0 %v2994_v2 }
 0xf49   : > { %3271 = vmatmul.mubr.msk.bf16.vlgmr.msra.gmra.mxu0 %vm4638_vm4, %v4429_v46  ;;  %v3597_v46 = vld [vmem:[%s3833_s28] sm:$0xff] }
 0xfce   : > { %v2917_v14 = vpop.f32.mrf.mxu0 }
 0xfcf   : > { %v2918_v48 = vadd.f32 %v2917_v14, %v2872_v47 }
 0xfd0   : > { %v2919_v19 = vpop.f32.mrf.mxu0 }
 0xfd1   : > { %v2924_v42 = vadd.f32 %v2918_v48, %v4204_v35  ;;  %v2920_v57 = vadd.f32 %v2919_v19, %v2872_v47 }
 0xfd2   : > { %v2921_v43 = vpop.f32.mrf.mxu0 }
 0xfd3   : > { %v2926_v30 = vmul.f32 0.01, %v2924_v42  ;;  %v2925_v15 = vadd.f32 %v2920_v57, %v4206_v38 }
 0xfd4   : > { %v2922_v6 = vpop.f32.mrf.mxu0 }
 0xfd5   : > { %v2928_v21 = vmax.f32 %v2924_v42, %v2926_v30  ;;  %v2927_v27 = vmul.f32 0.01, %v2925_v15 }
 0xfd7   : > { %v3110_v26 = vadd.f32 %v3597_v46, %v2928_v21  ;;  %v2929_v44 = vmax.f32 %v2925_v15, %v2927_v27 }
 0xfd9   : > { %3114 = vst [vmem:[%s4545_s2] sm:$0xff] %v3110_v26  ;;  %v3111_v0 = vadd.f32 %v3598_v50, %v2929_v44 }
 0xfdb   : > { %3115 = vst [vmem:[%s4545_s2 + $0x8] sm:$0xff] %v3111_v0 }
0x1009   : > { %v3044_v35 = vpop.f32.mrf.mxu0 }
0x100a   : > { %v3045_v32 = vadd.f32 %v3044_v35, %v4470_v54 }
0x100b   : > { %v3046_v1 = vpop.f32.mrf.mxu0 }
0x100c   : > { %v3051_v38 = vmul.f32 0.01, %v3045_v32  ;;  %v3047_v20 = vadd.f32 %v3046_v1, %v4470_v54 }
0x100d   : > { %v3048_v49 = vpop.f32.mrf.mxu0 }
0x100e   : > { %v3053_v5 = vmax.f32 %v3045_v32, %v3051_v38  ;;  %v3052_v58 = vmul.f32 0.01, %v3047_v20 }
0x100f   : > { %v3049_v22 = vpop.f32.mrf.mxu0 }
0x1010   : > { %v3055_v34 = vpack.c.bf16 %v3053_v5, %v3053_v5  ;;  %v3054_v61 = vmax.f32 %v3047_v20, %v3052_v58 }
0x1012   : > { %v3056_v8 = vpack.c.bf16 %v3054_v61, %v3054_v61  ;;  %v3058_v3 = vsel %vm1008_vm0, %v3055_v34, 0 }
0x1014   : > { %3272 = vmatprep.subr.msk.bf16.mxu1 %vm1008_vm0, %v3056_v8 }
0x1015   : > { %3078 = vmatpush1.bf16.msra.mxu1 %v3058_v3 }
0x1018   : > { %3273 = vmatmul.mubr.msk.bf16.vlgmr.msra.gmra.mxu1 %vm1004_vm1, %v4477_v18  ;;  %v3600_v18 = vld [vmem:[%s3833_s28 + $0x18] sm:$0xff] }
0x10d8   : > { %v3097_v33 = vpop.f32.mrf.mxu1 }
0x10d9   : > { %v3098_v54 = vadd.f32 %v3097_v33, %v2872_v47 }
0x10da   : > { %v3099_v28 = vpop.f32.mrf.mxu1 }
0x10db   : > { %v3104_v9 = vadd.f32 %v3098_v54, %v4234_v29  ;;  %v3100_v23 = vadd.f32 %v3099_v28, %v2872_v47 }
0x10dc   : > { %v3101_v7 = vpop.f32.mrf.mxu1 }
0x10dd   : > { %v3106_v31 = vmul.f32 0.01, %v3104_v9  ;;  %v3105_v37 = vadd.f32 %v3100_v23, %v4236_v25 }
0x10de   : > { %v3102_v4 = vpop.f32.mrf.mxu1 }
0x10df   : > { %v3108_v40 = vmax.f32 %v3104_v9, %v3106_v31  ;;  %v3107_v52 = vmul.f32 0.01, %v3105_v37 }
0x10e1   : > { %v3112_v53 = vadd.f32 %v3599_v55, %v3108_v40  ;;  %v3109_v60 = vmax.f32 %v3105_v37, %v3107_v52 }
0x10e3   : > { %3116 = vst [vmem:[%s4545_s2 + $0x10] sm:$0xff] %v3112_v53  ;;  %v3113_v62 = vadd.f32 %v3600_v18, %v3109_v60 }
0x10e5   : > { %3117 = vst [vmem:[%s4545_s2 + $0x18] sm:$0xff] %v3113_v62 }
0x10e6 PF: > { %s73_s22 = sadd.s32 1, %s3607_s22  }
0x10e7   : > { %p70_p4 = scmp.ge.s32.totalorder %s73_s22, 4  }
0x10e9   :  { %72 = sbr.rel (!%p70_p4) target bundleno = 53 (0x35), region = 209 }

</bundles_post_ra>
